<compile_context>
chip_gen: v7x
topology: tpu7x:2x2x1
jax: 0.10.0
libtpu: 0.0.40
codegen_flags: <defaults>
</compile_context>

<pallas_src>
import functools

import jax
import jax.numpy as jnp
from jax import lax
from jax.experimental import pallas as pl
from jax.experimental.pallas import tpu as pltpu

BN_EPS = 1e-5   # torch.nn.BatchNorm2d default eps
LANES = 128


# ------------------------------ Pallas kernels -------------------------------

def _conv_kernel(*refs, k, stride, Hb, Wo, TN, Cin):
    """One (batch-tile, row-band) step of a kxk conv, computed as ONE MXU matmul.

    refs = (phases[stride*stride], w_packed, raw_out, patch_scratch)
      phases[p*stride+q] : (TN, Hph, Wph, Cin) bf16 shifted-phase views of padded input
      w_packed           : (k*k*Cin, Cpad) bf16 host-packed, lane-padded weights
      raw_out            : (TN, Hb*Wo, Cpad) bf16 lane-dense raw conv output block
      patch_scratch      : (TN*Hb*Wo, k*k*Cin) bf16 VMEM im2col patch (never hits HBM)
    """
    nph = stride * stride
    phase_refs = refs[:nph]
    w_ref = refs[nph]
    raw_ref = refs[nph + 1]
    patch_ref = refs[nph + 2]

    j = pl.program_id(1)                    # output-row band index
    TM = TN * Hb * Wo
    cpad = w_ref.shape[-1]

    # Pack the k*k taps into one (TM, k*k*Cin) bf16 operand: each tap is a contiguous
    # static slice of the VMEM-resident phase tile stored at its lane offset.
    for kh in range(k):
        for kw in range(k):
            ph = phase_refs[(kh % stride) * stride + (kw % stride)]
            ho0 = kh // stride
            wo0 = kw // stride
            x = ph[:, pl.ds(j * Hb + ho0, Hb), wo0:wo0 + Wo, :]   # (TN,Hb,Wo,Cin) bf16
            t = kh * k + kw
            patch_ref[:, t * Cin:(t + 1) * Cin] = x.reshape(TM, Cin)

    # Single matmul, K = k*k*Cin (27 / 72 / 144 ...), f32 accumulate on the MXU.
    acc = jnp.dot(patch_ref[...], w_ref[...], preferred_element_type=jnp.float32)
    raw_ref[...] = acc.reshape(TN, Hb * Wo, cpad).astype(raw_ref.dtype)


def _bn_act_kernel(raw_ref, scale_ref, shift_ref, out_ref, *, Ho, Wo, Cout, relu, gap):
    """Fused BatchNorm-apply (folded scale/shift) + ReLU [+ global-average-pool].

    raw_ref : (1, Ho*Wo, Cpad) bf16 raw conv output of one image
    out_ref : gap=False -> (1, Ho, Wo, Cout) bf16 activation
              gap=True  -> (1, 1, Cpad) f32 pooled features (lane-dense; sliced on host)
    """
    x = raw_ref[...].astype(jnp.float32)                        # (1, Ho*Wo, Cpad)
    y = x * scale_ref[...].reshape(1, 1, -1) + shift_ref[...].reshape(1, 1, -1)
    if relu:                                                    # outRelu=True, leaky=False
        y = jnp.maximum(y, 0.0)
    if gap:
        out_ref[...] = jnp.mean(y, axis=1, keepdims=True)       # fused y.mean(dim=[2,3])
    else:
        out_ref[...] = y[:, :, :Cout].reshape(1, Ho, Wo, Cout).astype(out_ref.dtype)


# -------------------------------- JAX glue ------------------------------------

def _divisors(n):
    return [d for d in range(1, n + 1) if n % d == 0]


def _pick_tiles(N, Ho, Wo, target_rows=1024, min_steps=4):
    """Pick (batch tile TN, output-row band Hb) for the conv-pass grid.

    Prefer tiles whose row count fits `target_rows` (VMEM-friendly), then grids with
    at least `min_steps` steps (pipelining + megacore / v7x second core), then the
    largest such tile (amortizes the ~0.35us per-grid-step overhead).
    """
    best_key, best = None, (1, Ho)
    for tn in _divisors(N):
        for hb in _divisors(Ho):
            if hb != Ho and (hb * Wo) % 8 != 0:
                continue                     # keep raw-output blocks (8,128)-friendly
            rows = tn * hb * Wo
            steps = (N // tn) * (Ho // hb)
            key = (rows <= target_rows, steps >= min_steps,
                   rows if rows <= target_rows else -rows)
            if best_key is None or key > best_key:
                best_key, best = key, (tn, hb)
    return best


def _vmem_limit_bytes():
    # Per-generation VMEM budget: ~60% of physical (v5e/v6e 128MiB -> ~76MiB,
    # v7x 64MiB -> ~38MiB); conservative fallback if the query is unavailable.
    try:
        cap = int(pltpu.get_tpu_info().vmem_capacity_bytes)
        return int(min(96 * 2**20, max(32 * 2**20, (cap * 3) // 5)))
    except Exception:
        return 32 * 2**20


def conv_bn_2d(lp, x, *, stride, padding, relu=True, gap=False):
    """ConvBN2d.forward (lbda=None): conv(bias=False) -> BN(batch stats) -> ReLU.

    x: (N, H, W, Cin) NHWC activation (consumed as bf16).
    Returns (N, Ho, Wo, Cout) bf16, or (N, Cout) f32 when gap=True (last layer:
    global-average-pool fused into the BN/ReLU kernel).
    """
    w = lp["w"]                                    # (k, k, Cin, Cout)
    k, _, Cin, Cout = w.shape
    N, H, W, _ = x.shape
    Ho = (H + 2 * padding - k) // stride + 1
    Wo = (W + 2 * padding - k) // stride + 1
    K = k * k * Cin
    Cpad = ((Cout + LANES - 1) // LANES) * LANES
    M = N * Ho * Wo

    # Zero-pad once (bf16).  For stride>1, split into stride^2 phase views so every
    # conv tap is a contiguous static slice (total bytes == padded input, no im2col).
    Hph = (k - 1) // stride + Ho
    Wph = (k - 1) // stride + Wo
    Hp = max(H + 2 * padding, stride * Hph)
    Wp = max(W + 2 * padding, stride * Wph)
    xp = jnp.pad(x.astype(jnp.bfloat16),
                 ((0, 0), (padding, Hp - H - padding),
                  (padding, Wp - W - padding), (0, 0)))
    if stride == 1:
        phases = [xp]                              # single padded tensor, no extra copy
    else:
        # TODO(synk): move the stride-phase selection in-kernel
        # (ref[pl.ds(..., stride=s)]) to avoid these strided-view HBM copies.
        phases = [xp[:, p::stride, q::stride, :][:, :Hph, :Wph, :]
                  for p in range(stride) for q in range(stride)]

    # Host-side weight packing: (k,k,Cin,Cout) -> (k*k*Cin, Cpad) bf16, lane-padded.
    w_packed = jnp.pad(w.reshape(K, Cout), ((0, 0), (0, Cpad - Cout))).astype(jnp.bfloat16)

    TN, Hb = _pick_tiles(N, Ho, Wo)
    T, NB = N // TN, Ho // Hb
    TM = TN * Hb * Wo
    vmem = _vmem_limit_bytes()

    # -------- pass 1: conv (computed once per layer), lane-dense raw output --------
    phase_spec = pl.BlockSpec((TN, Hph, Wph, Cin), lambda i, j: (i, 0, 0, 0))
    w_spec = pl.BlockSpec((K, Cpad), lambda i, j: (0, 0))            # resident
    raw_spec = pl.BlockSpec((TN, Hb * Wo, Cpad), lambda i, j: (i, j, 0))

    in_bytes = sum(int(p.size) for p in phases) * 2 + int(w_packed.size) * 2
    cost = pl.CostEstimate(flops=2 * M * K * Cpad, transcendentals=0,
                           bytes_accessed=in_bytes + M * Cpad * 2)

    raw = pl.pallas_call(
        functools.partial(_conv_kernel, k=k, stride=stride, Hb=Hb, Wo=Wo,
                          TN=TN, Cin=Cin),
        grid=(T, NB),
        out_shape=jax.ShapeDtypeStruct((N, Ho * Wo, Cpad), jnp.bfloat16),
        in_specs=[phase_spec] * len(phases) + [w_spec],
        out_specs=raw_spec,
        scratch_shapes=[pltpu.VMEM((TM, K), jnp.bfloat16)],
        compiler_params=pltpu.CompilerParams(
            dimension_semantics=("parallel", "parallel"), vmem_limit_bytes=vmem),
        cost_estimate=cost,
    )(*phases, w_packed)

    # -------- exact BatchNorm batch statistics (f32, two-pass: no cancellation) ----
    rawf = raw.astype(jnp.float32)
    mean = jnp.mean(rawf, axis=(0, 1))                               # (Cpad,)
    var = jnp.mean(jnp.square(rawf - mean), axis=(0, 1))             # biased, as torch
    gamma = jnp.pad(lp["gamma"], (0, Cpad - Cout))
    beta = jnp.pad(lp["beta"], (0, Cpad - Cout))
    scale = gamma * lax.rsqrt(var + BN_EPS)
    shift = beta - mean * scale
    scale = scale.reshape(1, Cpad).astype(jnp.float32)
    shift = shift.reshape(1, Cpad).astype(jnp.float32)

    # ---- pass 2: fused BN-apply + ReLU (+ global-average-pool on the last layer) --
    raw_in_spec = pl.BlockSpec((1, Ho * Wo, Cpad), lambda i: (i, 0, 0))
    vec_spec = pl.BlockSpec((1, Cpad), lambda i: (0, 0))             # resident
    norm_params = pltpu.CompilerParams(dimension_semantics=("parallel",),
                                       vmem_limit_bytes=vmem)
    kern = functools.partial(_bn_act_kernel, Ho=Ho, Wo=Wo, Cout=Cout,
                             relu=relu, gap=gap)

    if gap:
        out = pl.pallas_call(
            kern, grid=(N,),
            out_shape=jax.ShapeDtypeStruct((N, 1, Cpad), jnp.float32),
            in_specs=[raw_in_spec, vec_spec, vec_spec],
            out_specs=pl.BlockSpec((1, 1, Cpad), lambda i: (i, 0, 0)),
            compiler_params=norm_params,
        )(raw, scale, shift)
        return out[:, 0, :Cout]                                      # (N, Cout)

    out = pl.pallas_call(
        kern, grid=(N,),
        out_shape=jax.ShapeDtypeStruct((N, Ho, Wo, Cout), jnp.bfloat16),
        in_specs=[raw_in_spec, vec_spec, vec_spec],
        out_specs=pl.BlockSpec((1, Ho, Wo, Cout), lambda i: (i, 0, 0, 0)),
        compiler_params=norm_params,
    )(raw, scale, shift)
    # TODO(synk): fuse the next layer's zero-padding into this store (emit the padded
    # activation directly) to also drop the host-side jnp.pad copy per layer.
    return out


# --------------------------- parameter construction ---------------------------

def init_convbn(key, in_f, out_f, k=3):
    # conv weight stored as (kh, kw, Cin, Cout); kaiming-normal(fan_out)-like scale.
    fan_out = k * k * out_f
    w = jax.random.normal(key, (k, k, in_f, out_f), jnp.float32) * jnp.sqrt(2.0 / fan_out)
    return {
        "w": w,
        "gamma": jnp.ones((out_f,), jnp.float32),    # BN weight init = 1
        "beta": jnp.zeros((out_f,), jnp.float32),    # BN bias init = 0
    }


def init_resnet(key, feature_maps, block_list, large=False):
    # TODO(synk): large=True path (7x7 stride-2 embed + nn.MaxPool2d) not implemented.
    assert not large
    keys = iter(jax.random.split(key, 64))
    params = {"embed": init_convbn(next(keys), 3, feature_maps, 3), "blocks": []}
    last_mult = 1
    for n_blocks, stride, multiplier in block_list:
        for i in range(n_blocks):
            in_f = int(feature_maps * last_mult)
            out_f = int(feature_maps * multiplier)
            s = 1 if i > 0 else stride
            # ResNet takes `block` as a constructor arg; instantiated here as a
            # ConvBN2d(in_f, out_f, 3x3, stride=s, pad=1, outRelu=True) layer — the
            # only dependent module supplied.  `in_expansion` is unused by that block.
            params["blocks"].append(
                {"conv": init_convbn(next(keys), in_f, out_f, 3), "stride": s}
            )
            last_mult = multiplier
    return params


# --------------------------------- forward ------------------------------------

def resnet_forward(params, x_nchw):
    # mixup / lbda / perm default to None in the reference forward -> no mixup branch.
    if x_nchw.shape[1] == 1:
        x_nchw = jnp.tile(x_nchw, (1, 3, 1, 1))
    y = jnp.transpose(x_nchw, (0, 2, 3, 1)).astype(jnp.bfloat16)     # NCHW -> NHWC bf16
    layers = [{"conv": params["embed"], "stride": 1}] + list(params["blocks"])
    for idx, lp in enumerate(layers):
        last = idx == len(layers) - 1
        # y.mean(dim=[2,3]) is fused into the last layer's BN/ReLU kernel (gap=True).
        y = conv_bn_2d(lp["conv"], y, stride=lp["stride"], padding=1,
                       relu=True, gap=last)
    return y                                                         # (N, C) float32


if __name__ == "__main__":
    key = jax.random.PRNGKey(0)
    pkey, xkey = jax.random.split(key)

    feature_maps = 8
    block_list = [(1, 2, 1), (1, 1, 2)]  # (nBlocks, stride, multiplier)
    params = init_resnet(pkey, feature_maps, block_list, large=False)

    x = jax.random.normal(xkey, (2, 3, 16, 16), jnp.float32)  # NCHW, like PyTorch

    out = resnet_forward(params, x)
    out = jax.block_until_ready(out)
    assert out.shape == (2, 16), out.shape
    print("KERNEL_OK")
</pallas_src>

<mosaic_0001>
module attributes {stable_mosaic.version = 11 : i64} {
  func.func @_conv_kernel(%arg0: i32, %arg1: i32, %arg2: memref<1x18x18x3xbf16, #tpu.memory_space<vmem>>, %arg3: memref<27x128xbf16, #tpu.memory_space<vmem>>, %arg4: memref<1x128x128xbf16, #tpu.memory_space<vmem>>, %arg5: memref<128x27xbf16, #tpu.memory_space<vmem>>) attributes {dimension_semantics = [#tpu.dimension_semantics<parallel>, #tpu.dimension_semantics<parallel>], iteration_bounds = array<i64: 2, 2>, scalar_prefetch = 0 : i64, scratch_operands = 1 : i64, tpu.core_type = #tpu.core_type<tc>, window_params = [{transform_indices = @transform_0, window_bounds = array<i64: 1, 18, 18, 3>}, {pipeline_mode = #tpu.pipeline_mode<synchronous>, transform_indices = @transform_1, window_bounds = array<i64: 27, 128>}, {transform_indices = @transform_2, window_bounds = array<i64: 1, 128, 128>}]} {
    %c8_i32 = arith.constant 8 : i32
    %0 = arith.muli %arg1, %c8_i32 : i32
    %c0_i32 = arith.constant 0 : i32
    %1 = arith.addi %0, %c0_i32 : i32
    %c0 = arith.constant 0 : index
    %2 = arith.index_cast %1 : i32 to index
    %c0_0 = arith.constant 0 : index
    %c0_1 = arith.constant 0 : index
    %3 = vector.load %arg2[%c0, %2, %c0_0, %c0_1] : memref<1x18x18x3xbf16, #tpu.memory_space<vmem>>, vector<1x8x16x3xbf16>
    %4 = vector.shape_cast %3 : vector<1x8x16x3xbf16> to vector<128x3xbf16>
    %c0_2 = arith.constant 0 : index
    %c0_3 = arith.constant 0 : index
    %5 = vector.load %arg5[%c0_2, %c0_3] : memref<128x27xbf16, #tpu.memory_space<vmem>>, vector<128x3xbf16>
    tpu.vector_store %arg5[%c0_2, %c0_3], %4 {strides = array<i32>} : memref<128x27xbf16, #tpu.memory_space<vmem>>, vector<128x3xbf16>,
    %c8_i32_4 = arith.constant 8 : i32
    %6 = arith.muli %arg1, %c8_i32_4 : i32
    %c0_i32_5 = arith.constant 0 : i32
    %7 = arith.addi %6, %c0_i32_5 : i32
    %c0_6 = arith.constant 0 : index
    %8 = arith.index_cast %7 : i32 to index
    %c1 = arith.constant 1 : index
    %c0_7 = arith.constant 0 : index
    %9 = vector.load %arg2[%c0_6, %8, %c1, %c0_7] : memref<1x18x18x3xbf16, #tpu.memory_space<vmem>>, vector<1x8x16x3xbf16>
    %10 = vector.shape_cast %9 : vector<1x8x16x3xbf16> to vector<128x3xbf16>
    %c0_8 = arith.constant 0 : index
    %c3 = arith.constant 3 : index
    %11 = vector.load %arg5[%c0_8, %c3] : memref<128x27xbf16, #tpu.memory_space<vmem>>, vector<128x3xbf16>
    tpu.vector_store %arg5[%c0_8, %c3], %10 {strides = array<i32>} : memref<128x27xbf16, #tpu.memory_space<vmem>>, vector<128x3xbf16>,
    %c8_i32_9 = arith.constant 8 : i32
    %12 = arith.muli %arg1, %c8_i32_9 : i32
    %c0_i32_10 = arith.constant 0 : i32
    %13 = arith.addi %12, %c0_i32_10 : i32
    %c0_11 = arith.constant 0 : index
    %14 = arith.index_cast %13 : i32 to index
    %c2 = arith.constant 2 : index
    %c0_12 = arith.constant 0 : index
    %15 = vector.load %arg2[%c0_11, %14, %c2, %c0_12] : memref<1x18x18x3xbf16, #tpu.memory_space<vmem>>, vector<1x8x16x3xbf16>
    %16 = vector.shape_cast %15 : vector<1x8x16x3xbf16> to vector<128x3xbf16>
    %c0_13 = arith.constant 0 : index
    %c6 = arith.constant 6 : index
    %17 = vector.load %arg5[%c0_13, %c6] : memref<128x27xbf16, #tpu.memory_space<vmem>>, vector<128x3xbf16>
    tpu.vector_store %arg5[%c0_13, %c6], %16 {strides = array<i32>} : memref<128x27xbf16, #tpu.memory_space<vmem>>, vector<128x3xbf16>,
    %c8_i32_14 = arith.constant 8 : i32
    %18 = arith.muli %arg1, %c8_i32_14 : i32
    %c1_i32 = arith.constant 1 : i32
    %19 = arith.addi %18, %c1_i32 : i32
    %c0_15 = arith.constant 0 : index
    %20 = arith.index_cast %19 : i32 to index
    %c0_16 = arith.constant 0 : index
    %c0_17 = arith.constant 0 : index
    %21 = vector.load %arg2[%c0_15, %20, %c0_16, %c0_17] : memref<1x18x18x3xbf16, #tpu.memory_space<vmem>>, vector<1x8x16x3xbf16>
    %22 = vector.shape_cast %21 : vector<1x8x16x3xbf16> to vector<128x3xbf16>
    %c0_18 = arith.constant 0 : index
    %c9 = arith.constant 9 : index
    %23 = vector.load %arg5[%c0_18, %c9] : memref<128x27xbf16, #tpu.memory_space<vmem>>, vector<128x3xbf16>
    tpu.vector_store %arg5[%c0_18, %c9], %22 {strides = array<i32>} : memref<128x27xbf16, #tpu.memory_space<vmem>>, vector<128x3xbf16>,
    %c8_i32_19 = arith.constant 8 : i32
    %24 = arith.muli %arg1, %c8_i32_19 : i32
    %c1_i32_20 = arith.constant 1 : i32
    %25 = arith.addi %24, %c1_i32_20 : i32
    %c0_21 = arith.constant 0 : index
    %26 = arith.index_cast %25 : i32 to index
    %c1_22 = arith.constant 1 : index
    %c0_23 = arith.constant 0 : index
    %27 = vector.load %arg2[%c0_21, %26, %c1_22, %c0_23] : memref<1x18x18x3xbf16, #tpu.memory_space<vmem>>, vector<1x8x16x3xbf16>
    %28 = vector.shape_cast %27 : vector<1x8x16x3xbf16> to vector<128x3xbf16>
    %c0_24 = arith.constant 0 : index
    %c12 = arith.constant 12 : index
    %29 = vector.load %arg5[%c0_24, %c12] : memref<128x27xbf16, #tpu.memory_space<vmem>>, vector<128x3xbf16>
    tpu.vector_store %arg5[%c0_24, %c12], %28 {strides = array<i32>} : memref<128x27xbf16, #tpu.memory_space<vmem>>, vector<128x3xbf16>,
    %c8_i32_25 = arith.constant 8 : i32
    %30 = arith.muli %arg1, %c8_i32_25 : i32
    %c1_i32_26 = arith.constant 1 : i32
    %31 = arith.addi %30, %c1_i32_26 : i32
    %c0_27 = arith.constant 0 : index
    %32 = arith.index_cast %31 : i32 to index
    %c2_28 = arith.constant 2 : index
    %c0_29 = arith.constant 0 : index
    %33 = vector.load %arg2[%c0_27, %32, %c2_28, %c0_29] : memref<1x18x18x3xbf16, #tpu.memory_space<vmem>>, vector<1x8x16x3xbf16>
    %34 = vector.shape_cast %33 : vector<1x8x16x3xbf16> to vector<128x3xbf16>
    %c0_30 = arith.constant 0 : index
    %c15 = arith.constant 15 : index
    %35 = vector.load %arg5[%c0_30, %c15] : memref<128x27xbf16, #tpu.memory_space<vmem>>, vector<128x3xbf16>
    tpu.vector_store %arg5[%c0_30, %c15], %34 {strides = array<i32>} : memref<128x27xbf16, #tpu.memory_space<vmem>>, vector<128x3xbf16>,
    %c8_i32_31 = arith.constant 8 : i32
    %36 = arith.muli %arg1, %c8_i32_31 : i32
    %c2_i32 = arith.constant 2 : i32
    %37 = arith.addi %36, %c2_i32 : i32
    %c0_32 = arith.constant 0 : index
    %38 = arith.index_cast %37 : i32 to index
    %c0_33 = arith.constant 0 : index
    %c0_34 = arith.constant 0 : index
    %39 = vector.load %arg2[%c0_32, %38, %c0_33, %c0_34] : memref<1x18x18x3xbf16, #tpu.memory_space<vmem>>, vector<1x8x16x3xbf16>
    %40 = vector.shape_cast %39 : vector<1x8x16x3xbf16> to vector<128x3xbf16>
    %c0_35 = arith.constant 0 : index
    %c18 = arith.constant 18 : index
    %41 = vector.load %arg5[%c0_35, %c18] : memref<128x27xbf16, #tpu.memory_space<vmem>>, vector<128x3xbf16>
    tpu.vector_store %arg5[%c0_35, %c18], %40 {strides = array<i32>} : memref<128x27xbf16, #tpu.memory_space<vmem>>, vector<128x3xbf16>,
    %c8_i32_36 = arith.constant 8 : i32
    %42 = arith.muli %arg1, %c8_i32_36 : i32
    %c2_i32_37 = arith.constant 2 : i32
    %43 = arith.addi %42, %c2_i32_37 : i32
    %c0_38 = arith.constant 0 : index
    %44 = arith.index_cast %43 : i32 to index
    %c1_39 = arith.constant 1 : index
    %c0_40 = arith.constant 0 : index
    %45 = vector.load %arg2[%c0_38, %44, %c1_39, %c0_40] : memref<1x18x18x3xbf16, #tpu.memory_space<vmem>>, vector<1x8x16x3xbf16>
    %46 = vector.shape_cast %45 : vector<1x8x16x3xbf16> to vector<128x3xbf16>
    %c0_41 = arith.constant 0 : index
    %c21 = arith.constant 21 : index
    %47 = vector.load %arg5[%c0_41, %c21] : memref<128x27xbf16, #tpu.memory_space<vmem>>, vector<128x3xbf16>
    tpu.vector_store %arg5[%c0_41, %c21], %46 {strides = array<i32>} : memref<128x27xbf16, #tpu.memory_space<vmem>>, vector<128x3xbf16>,
    %c8_i32_42 = arith.constant 8 : i32
    %48 = arith.muli %arg1, %c8_i32_42 : i32
    %c2_i32_43 = arith.constant 2 : i32
    %49 = arith.addi %48, %c2_i32_43 : i32
    %c0_44 = arith.constant 0 : index
    %50 = arith.index_cast %49 : i32 to index
    %c2_45 = arith.constant 2 : index
    %c0_46 = arith.constant 0 : index
    %51 = vector.load %arg2[%c0_44, %50, %c2_45, %c0_46] : memref<1x18x18x3xbf16, #tpu.memory_space<vmem>>, vector<1x8x16x3xbf16>
    %52 = vector.shape_cast %51 : vector<1x8x16x3xbf16> to vector<128x3xbf16>
    %c0_47 = arith.constant 0 : index
    %c24 = arith.constant 24 : index
    %53 = vector.load %arg5[%c0_47, %c24] : memref<128x27xbf16, #tpu.memory_space<vmem>>, vector<128x3xbf16>
    tpu.vector_store %arg5[%c0_47, %c24], %52 {strides = array<i32>} : memref<128x27xbf16, #tpu.memory_space<vmem>>, vector<128x3xbf16>,
    %c0_48 = arith.constant 0 : index
    %c0_49 = arith.constant 0 : index
    %54 = vector.load %arg5[%c0_48, %c0_49] : memref<128x27xbf16, #tpu.memory_space<vmem>>, vector<128x27xbf16>
    %c0_50 = arith.constant 0 : index
    %c0_51 = arith.constant 0 : index
    %55 = vector.load %arg3[%c0_50, %c0_51] : memref<27x128xbf16, #tpu.memory_space<vmem>>, vector<27x128xbf16>
    %cst = arith.constant dense<0.000000e+00> : vector<128x128xf32>
    %56 = tpu.matmul %54, %55, %cst {dimension_numbers = #tpu.dot_dimension_numbers<[1], [0], [0], [1], [0, 0, 1, 1], [], []>} : vector<128x27xbf16>, vector<27x128xbf16>, vector<128x128xf32> -> vector<128x128xf32>
    %57 = vector.shape_cast %56 : vector<128x128xf32> to vector<1x128x128xf32>
    %58 = arith.truncf %57 : vector<1x128x128xf32> to vector<1x128x128xbf16>
    %c0_52 = arith.constant 0 : index
    %c0_53 = arith.constant 0 : index
    %c0_54 = arith.constant 0 : index
    %59 = vector.load %arg4[%c0_52, %c0_53, %c0_54] : memref<1x128x128xbf16, #tpu.memory_space<vmem>>, vector<1x128x128xbf16>
    tpu.vector_store %arg4[%c0_52, %c0_53, %c0_54], %58 {strides = array<i32>} : memref<1x128x128xbf16, #tpu.memory_space<vmem>>, vector<1x128x128xbf16>,
    return
  }
  func.func @transform_0(%arg0: i32, %arg1: i32) -> (i32, i32, i32, i32) {
    %c0_i32 = arith.constant 0 : i32
    %c0_i32_0 = arith.constant 0 : i32
    %c0_i32_1 = arith.constant 0 : i32
    %c0_i32_2 = arith.constant 0 : i32
    return %arg0, %c0_i32, %c0_i32_0, %c0_i32_1 : i32, i32, i32, i32
  }
  func.func @transform_1(%arg0: i32, %arg1: i32) -> (i32, i32) {
    %c0_i32 = arith.constant 0 : i32
    %c0_i32_0 = arith.constant 0 : i32
    %c0_i32_1 = arith.constant 0 : i32
    return %c0_i32, %c0_i32_0 : i32, i32
  }
  func.func @transform_2(%arg0: i32, %arg1: i32) -> (i32, i32, i32) {
    %c0_i32 = arith.constant 0 : i32
    %c0_i32_0 = arith.constant 0 : i32
    return %arg0, %arg1, %c0_i32 : i32, i32, i32
  }
}

</mosaic_0001>

<bundles_post_ra>
// kernel: tpu_custom_call.1
= control target key start
LH: loop header
LB: loop body
LE: loop exit
PB: predicated region body
PF: predicated region fallthrough
CT: control target
= control target key end

     0   :  { %7 = vsyncpa [#allocation4], 0  ;;  %s3344_s0 = inlined_call_operand.vmem [shape: bf16[2,18,18,3], index: 0, kind: input, shape index: {}]   ;;  %s3345_s1 = inlined_call_operand.vmem [shape: bf16[27,128], index: 1, kind: input, shape index: {}]   ;;  %s3346_s2 = inlined_call_operand.hbm [shape: bf16[2,256,128], index: 2, kind: output, shape index: {}]  }
   0x1   :  { %9 = vsyncpa [#allocation4 + $0x1], 0  ;;  %s2663_s9 = smov 0   ;;  %s2665_s10 = smov 0  }
   0x2   :  { %s2667_s11 = smov 0   ;;  %s2669_s12 = smov 0  }
   0x3   :  { %s2671_s13 = smov 0   ;;  %s2673_s14 = smov 0  }
   0x4   :  { %s2675_s15 = smov 0   ;;  %s2677_s16 = smov 0  }
   0x5 LB: > { %s2063_s17 = sadd.s32 4294967295, %s2634_s16   ;;  %s2064_s18 = sadd.s32 4294967294, %s2634_s16   ;;  %s2634_s16 = sphi %s2677_s16, %s15_s16   ;;  %s2630_s15 = sphi %s2675_s15, %s3359_s15   ;;  %s2626_s14 = sphi %s2673_s14, %s3358_s14   ;;  %s2622_s13 = sphi %s2671_s13, %s3357_s13   ;;  %s2618_s12 = sphi %s2669_s12, %s3356_s12   ;;  %s2614_s11 = sphi %s2667_s11, %s3355_s11   ;;  %s2610_s10 = sphi %s2665_s10, %s3354_s10   ;;  %s2606_s9 = sphi %s2663_s9, %s3353_s9  }
   0x6   : > { %s24_s19 = sadd.s32 1, %s2626_s14  ;;  %s27_s20 = sadd.s32 1, %s2630_s15 }
   0x7   : > { %p25_p0 = scmp.ge.s32.totalorder %s24_s19, 2  ;;  %p93_p1 = scmp.ne.s32.totalorder %s2614_s11, %s2610_s10 }
   0x8   : > { %p94_p2 = scmp.eq.s32.totalorder %s2063_s17, 3  ;;  %p99_p5 = scmp.ne.s32.totalorder %s2610_s10, %s2606_s9 }
   0x9   : > { %s3361_s19 = smov (%p25_p0, %s24_s19), 0  ;;  %s3363_s20 = smov (!%p25_p0, %s27_s20), %s2630_s15 }
   0xa   : > { %s79_s21 = ssub.s32 %s2626_s14, %s3361_s19  ;;  %p2714_p3 = por %p94_p2, %p93_p1 }
   0xb   : > { %p29_p4 = scmp.ge.s32.totalorder %s3363_s20, 2  ;;  %p100_p6 = scmp.eq.s32.totalorder %s2064_s18, 3 }
   0xc   : > { %p2067_p7 = scmp.ge.s32.totalorder %s2634_s16, 1  ;;  %p129_p9 = scmp.lt.s32.totalorder %s2634_s16, 5 }
   0xd   : > { %s3365_s20 = smov (%p29_p4, %s3363_s20), 0  ;;  %p2723_p8 = por %p100_p6, %p99_p5 }
   0xe   : > { %s78_s24 = ssub.s32 %s2630_s15, %s3365_s20  ;;  %s83_s25 = sadd.s32 1, %s2614_s11 }
   0xf   : > { %s80_s26 = sor.u32 %s79_s21, %s78_s24  ;;  %p130_p10 = pnand %p2067_p7, %p129_p9 }
  0x10   : > { %p81_p11 = scmp.eq.s32.totalorder %s80_s26, 0  ;;  %p151_p12 = scmp.lt.s32.totalorder (!%p130_p10), %s2622_s13, 1  ;;  %vm559_vm0 = vcmask (!%p130_p10), 1042432   ;;  %vm560_vm1 = vcmask (!%p130_p10), 1046532   ;;  %vm259_vm3 = vsmask.f32 (!%p130_p10), 3328 }
  0x11   : > { %133 = sbr.rel (%p130_p10) target bundleno = 541 (0x21d), region = 28  ;;  %vm2742_vm2 = vmor (!%p130_p10), %vm559_vm0, %vm560_vm1  ;;  %s2636_s7 = smov (!%p130_p10), 9   ;;  %vm260_vm4 = vsmask.f32 (!%p130_p10), 7440  ;;  %vm226_vm6 = vcmask (!%p130_p10), 23552   ;;  %vm502_vm7 = vcmask (!%p130_p10), 48152  }
  0x12   : > { %s2732_s27 = scalar_select %p81_p11, %s2614_s11, %s83_s25  }
  0x13   : > { %s2333_s29 = smul.u32 (!%p130_p10), 96, %s2618_s12  ;;  %s2637_s8 = smov (!%p130_p10), 6   ;;  %vm2796_vm5 = vmor (!%p130_p10), %vm259_vm3, %vm260_vm4  ;;  %vm666_vm8 = vcmask (!%p130_p10), 72752   ;;  %vm759_vm9 = vcmask (!%p130_p10), 97352   ;;  %vm1777_vm10 = vcmask (!%p130_p10), 1044480   ;;  %vm1778_vm11 = vcmask (!%p130_p10), 1045504  }
  0x14   : > { %s2638_s17 = smov (!%p130_p10), 3   ;;  %s2639_s18 = smov (!%p130_p10), 12   ;;  %vm1032_vm12 = vcmask (!%p130_p10), 121952   ;;  %v2644_v0 = vmov (!%p130_p10), 65535   ;;  %vm1193_vm13 = vcmask (!%p130_p10), 146552   ;;  %vm1286_vm14 = vcmask (!%p130_p10), 171152  }
  0x15   : > { %s2640_s21 = smov (!%p130_p10), 15   ;;  %s2641_s24 = smov (!%p130_p10), 18   ;;  %vm1559_vm15 = vcmask (!%p130_p10), 195752   ;;  %vm1720_vm0 = vcmask (!%p130_p10), 220352   ;;  %vm1752_vm1 = vcmask (!%p130_p10), 220160  }
  0x16   : > { %s2642_s25 = smov (!%p130_p10), 21   ;;  %s2643_s26 = smov (!%p130_p10), 24  }
  0x17   : > { %s148_s4 = sand.u32 (!%p130_p10), 1, %s2610_s10  }
  0x18   : > { %s152_s28 = scalar_select %p151_p12, %s2622_s13, 1 }
  0x1a   : > { %s2431_s30 = smul.u32 216, %s152_s28  ;;  %s2645_s28 = smov [#allocation3]  }
  0x1c   : > { %s155_s5 = scalar_lea.vmem %s3344_s0, %s2431_s30 }
  0x1d   : > { %s2740_s6 = scalar_lea.vmem %s155_s5, %s2333_s29  ;;  %s2068_s5 = sshll.u32 %s148_s4, 6 }
  0x1e   : > { %v2514_v1 = vld [vmem:[%s2740_s6 + $0x3c] sm:$0xff]   ;;  %v2515_v2 = vld [vmem:[%s2740_s6 + $0xc] sm:$0xff]   ;;  %v524_v6 = vld [vmem:[%s2740_s6 + $0x34] sm:$0xf]  ;;  %s2544_s29 = sshll.u32 %s2645_s28, 4  ;;  %s2545_s29 = int_to_ptr.vmem [resolvable:$false] %s2544_s29 }
  0x1f   : > { %743 = vrot.lane.b32.xlu1 %v2514_v1, %s2636_s7  ;;  %v2516_v3 = vld [vmem:[%s2740_s6 + $0x48] sm:$0xff]   ;;  %735 = vrot.lane.b32.xlu0 %v2515_v2, %s2636_s7  ;;  %v2517_v4 = vld [vmem:[%s2740_s6 + $0x18] sm:$0xff]   ;;  %v592_v9 = vrot.slane %v524_v6, 5  ;;  %s2546_s30 = scalar_lea.vmem %s2545_s29, 2048 }
  0x20   : > { %v523_v5 = vld [vmem:[%s2740_s6 + $0x30] sm:$0xe]  ;;  %v525_v7 = vld [vmem:[%s2740_s6 + $0x38] sm:$0x1]  ;;  %v511_v11 = vld [vmem:[%s2740_s6] sm:$0xe] }
  0x21   : > { %v2093_v8 = vrot.slane %v523_v5, 9  ;;  %v595_v10 = vrot.slane %v525_v7, 5  ;;  %v512_v12 = vld [vmem:[%s2740_s6 + $0x4] sm:$0xf]  ;;  %v513_v13 = vld [vmem:[%s2740_s6 + $0x8] sm:$0x1] }
  0x22   : > { %v2089_v14 = vrot.slane %v511_v11, 9  ;;  %v594_v16 = vrot.slane %v592_v9, 4  ;;  %v564_v17 = vrot.slane %v512_v12, 5  ;;  %v567_v18 = vrot.slane %v513_v13, 5  ;;  %v526_v19 = vld [vmem:[%s2740_s6 + $0x3c] sm:$0xe] }
  0x23   : > { %745 = vrot.lane.b32.xlu1 %v2516_v3, %s2636_s7  ;;  %737 = vrot.lane.b32.xlu0 %v2517_v4, %s2636_s7  ;;  %v593_v15 = vsel %vm2742_vm2, %v2093_v8, %v592_v9  ;;  %v527_v20 = vld [vmem:[%s2740_s6 + $0x40] sm:$0xf]  ;;  %v528_v21 = vld [vmem:[%s2740_s6 + $0x44] sm:$0x1]  ;;  %v2094_v22 = vrot.slane %v526_v19, 9 }
  0x24   : > { %v596_v23 = vsel %vm2742_vm2, %v594_v16, %v595_v10  ;;  %v565_v24 = vsel %vm2742_vm2, %v2089_v14, %v564_v17  ;;  %v566_v25 = vrot.slane %v564_v17, 4  ;;  %v599_v26 = vrot.slane %v527_v20, 5  ;;  %v514_v27 = vld [vmem:[%s2740_s6 + $0xc] sm:$0xe]  ;;  %v515_v28 = vld [vmem:[%s2740_s6 + $0x10] sm:$0xf] }
  0x25   : > { %v2101_v29 = vcombine.low %v593_v15, %v596_v23  ;;  %v602_v30 = vrot.slane %v528_v21, 5  ;;  %v516_v31 = vld [vmem:[%s2740_s6 + $0x14] sm:$0x1]  ;;  %v2090_v32 = vrot.slane %v514_v27, 9  ;;  %v571_v33 = vrot.slane %v515_v28, 5 }
  0x26   : > { %v568_v34 = vsel %vm2742_vm2, %v566_v25, %v567_v18  ;;  %v600_v35 = vsel %vm2742_vm2, %v2094_v22, %v599_v26  ;;  %v601_v36 = vrot.slane %v599_v26, 4  ;;  %v574_v37 = vrot.slane %v516_v31, 5  ;;  %v238_v38 = vld [vmem:[%s2740_s6 + $0xc] sm:$0xf]  ;;  %v239_v39 = vld [vmem:[%s2740_s6 + $0x10] sm:$0xf] }
  0x27   : > { %650 = vrot.lane.b32.xlu1 %v2101_v29, %s2637_s8  ;;  %v2097_v40 = vcombine.low %v565_v24, %v568_v34  ;;  %v572_v41 = vsel %vm2742_vm2, %v2090_v32, %v571_v33  ;;  %v573_v42 = vrot.slane %v571_v33, 4  ;;  %v240_v43 = vld [vmem:[%s2740_s6 + $0x14] sm:$0x1]  ;;  %v287_v44 = vshrl.u32 %v238_v38, 16  ;;  %v235_v45 = vld [vmem:[%s2740_s6] sm:$0xf] }
  0x28   : > { %v603_v46 = vsel %vm2742_vm2, %v601_v36, %v602_v30  ;;  %v290_v47 = vshll.u32 %v238_v38, 16  ;;  %v296_v48 = vshll.u32 %v239_v39, 16  ;;  %v300_v49 = vshrl.u32 %v239_v39, 16  ;;  %v236_v50 = vld [vmem:[%s2740_s6 + $0x4] sm:$0xf] }
  0x29   : > { %642 = vrot.lane.b32.xlu0 %v2097_v40, %s2637_s8  ;;  %v2102_v51 = vcombine.low %v600_v35, %v603_v46  ;;  %v575_v52 = vsel %vm2742_vm2, %v573_v42, %v574_v37  ;;  %v289_v53 = vrot.slane %v287_v44, 4  ;;  %v306_v54 = vshll.u32 %v240_v43, 16  ;;  %v237_v55 = vld [vmem:[%s2740_s6 + $0x8] sm:$0x1]  ;;  %v250_v60 = vld [vmem:[%s2740_s6 + $0x3c] sm:$0xf] }
  0x2a   : > { %v2098_v56 = vcombine.low %v572_v41, %v575_v52  ;;  %v292_v57 = vrot.slane %v290_v47, 5  ;;  %v298_v58 = vrot.slane %v296_v48, 5  ;;  %v302_v59 = vrot.slane %v300_v49, 4  ;;  %v251_v6 = vld [vmem:[%s2740_s6 + $0x40] sm:$0xf] }
  0x2b   : > { %652 = vrot.lane.b32.xlu1 %v2102_v51, %s2637_s8  ;;  %v308_v61 = vrot.slane %v306_v54, 5  ;;  %v263_v62 = vshrl.u32 %v235_v45, 16  ;;  %v266_v63 = vshll.u32 %v235_v45, 16  ;;  %v272_v1 = vshll.u32 %v236_v50, 16  ;;  %v252_v16 = vld [vmem:[%s2740_s6 + $0x44] sm:$0x1] }
  0x2c   : > { %v293_v2 = vor.u32 %v292_v57, %v289_v53  ;;  %v303_v3 = vor.u32 %v302_v59, %v298_v58  ;;  %v276_v4 = vshrl.u32 %v236_v50, 16  ;;  %v282_v5 = vshll.u32 %v237_v55, 16  ;;  %v247_v21 = vld [vmem:[%s2740_s6 + $0x30] sm:$0xf]  ;;  %v248_v26 = vld [vmem:[%s2740_s6 + $0x34] sm:$0xf] }
  0x2d   : > { %644 = vrot.lane.b32.xlu0 %v2098_v56, %s2637_s8  ;;  %v265_v8 = vrot.slane %v263_v62, 4  ;;  %v268_v9 = vrot.slane %v266_v63, 5  ;;  %v274_v10 = vrot.slane %v272_v1, 5  ;;  %v383_v11 = vshrl.u32 %v250_v60, 16  ;;  %v249_v37 = vld [vmem:[%s2740_s6 + $0x38] sm:$0x1] }
  0x2e   : > { %v294_v12 = vrot.slane %v293_v2, 4  ;;  %v304_v13 = vrot.slane %v303_v3, 4  ;;  %v278_v14 = vrot.slane %v276_v4, 4  ;;  %v284_v15 = vrot.slane %v282_v5, 5  ;;  %v2143_v40 = vld [vmem:[%s2740_s6 + $0x3c] sm:$0xf] }
  0x2f   : > { %v269_v17 = vor.u32 %v268_v9, %v265_v8  ;;  %v385_v18 = vrot.slane %v383_v11, 4  ;;  %v386_v19 = vshll.u32 %v250_v60, 16  ;;  %v392_v20 = vshll.u32 %v251_v6, 16  ;;  %v2144_v45 = vld [vmem:[%s2740_s6 + $0x40] sm:$0xf] }
  0x30   : > { %v299_v22 = vsel %vm2796_vm5, %v294_v12, %v298_v58  ;;  %v309_v23 = vsel %vm2796_vm5, %v304_v13, %v308_v61  ;;  %v279_v24 = vor.u32 %v278_v14, %v274_v10  ;;  %v396_v25 = vshrl.u32 %v251_v6, 16  ;;  %v2145_v56 = vld [vmem:[%s2740_s6 + $0x44] sm:$0x1]  ;;  %v2131_v59 = vld [vmem:[%s2740_s6 + $0xc] sm:$0xf] }
  0x31   : > { %v2082_v27 = vcombine.low %v299_v22, %v309_v23  ;;  %v270_v28 = vrot.slane %v269_v17, 4  ;;  %v388_v29 = vrot.slane %v386_v19, 5  ;;  %v394_v30 = vrot.slane %v392_v20, 5  ;;  %v2132_v1 = vld [vmem:[%s2740_s6 + $0x10] sm:$0xf] }
  0x32   : > { %v280_v31 = vrot.slane %v279_v24, 4  ;;  %v398_v32 = vrot.slane %v396_v25, 4  ;;  %v402_v33 = vshll.u32 %v252_v16, 16  ;;  %v359_v34 = vshrl.u32 %v247_v21, 16  ;;  %v2133_v13 = vld [vmem:[%s2740_s6 + $0x14] sm:$0x1] }
  0x33   : > { %480 = vrot.lane.b32.xlu1 %v2082_v27, %s2638_s17  ;;  %v275_v35 = vsel %vm2796_vm5, %v270_v28, %v274_v10  ;;  %v389_v36 = vor.u32 %v388_v29, %v385_v18  ;;  %v362_v38 = vshll.u32 %v247_v21, 16  ;;  %v368_v39 = vshll.u32 %v248_v26, 16  ;;  %v2146_v16 = vld [vmem:[%s2740_s6 + $0x48] sm:$0xf]  ;;  %v2147_v28 = vld [vmem:[%s2740_s6 + $0x4c] sm:$0xf] }
  0x34   : > { %v285_v41 = vsel %vm2796_vm5, %v280_v31, %v284_v15  ;;  %v399_v42 = vor.u32 %v398_v32, %v394_v30  ;;  %v404_v43 = vrot.slane %v402_v33, 5  ;;  %v361_v44 = vrot.slane %v359_v34, 4  ;;  %v2148_v29 = vld [vmem:[%s2740_s6 + $0x50] sm:$0x1] }
  0x35   : > { %v2081_v46 = vcombine.low %v275_v35, %v285_v41  ;;  %v390_v47 = vrot.slane %v389_v36, 4  ;;  %v364_v48 = vrot.slane %v362_v38, 5  ;;  %v370_v49 = vrot.slane %v368_v39, 5  ;;  %v2134_v35 = vld [vmem:[%s2740_s6 + $0x18] sm:$0xf] }
  0x36   : > { %v400_v50 = vrot.slane %v399_v42, 4  ;;  %v372_v51 = vshrl.u32 %v248_v26, 16  ;;  %v378_v52 = vshll.u32 %v249_v37, 16  ;;  %v889_v53 = vshrl.u32 %v2143_v40, 16 }
  0x37   : > { %478 = vrot.lane.b32.xlu0 %v2081_v46, %s2638_s17  ;;  %v395_v54 = vsel %vm2796_vm5, %v390_v47, %v394_v30  ;;  %v365_v55 = vor.u32 %v364_v48, %v361_v44  ;;  %v892_v57 = vshll.u32 %v2143_v40, 16  ;;  %v898_v58 = vshll.u32 %v2144_v45, 16  ;;  %v2135_v40 = vld [vmem:[%s2740_s6 + $0x1c] sm:$0xf] }
  0x38   : > { %v405_v60 = vsel %vm2796_vm5, %v400_v50, %v404_v43  ;;  %v374_v61 = vrot.slane %v372_v51, 4  ;;  %v380_v62 = vrot.slane %v378_v52, 5  ;;  %v891_v63 = vrot.slane %v889_v53, 4  ;;  %v2175_v50 = vld [vmem:[%s2740_s6 + $0x3c] sm:$0xe] }
  0x39   : > { %v2086_v2 = vcombine.low %v395_v54, %v405_v60  ;;  %v366_v3 = vrot.slane %v365_v55, 4  ;;  %v894_v4 = vrot.slane %v892_v57, 5  ;;  %v900_v5 = vrot.slane %v898_v58, 5  ;;  %v2176_v55 = vld [vmem:[%s2740_s6 + $0x40] sm:$0xf] }
  0x3a   : > { %v375_v6 = vor.u32 %v374_v61, %v370_v49  ;;  %v902_v8 = vshrl.u32 %v2144_v45, 16  ;;  %v908_v9 = vshll.u32 %v2145_v56, 16  ;;  %v793_v10 = vshrl.u32 %v2131_v59, 16  ;;  %v2136_v45 = vld [vmem:[%s2740_s6 + $0x20] sm:$0x1] }
  0x3b   : > { %488 = vrot.lane.b32.xlu1 %v2086_v2, %s2638_s17  ;;  %v371_v11 = vsel %vm2796_vm5, %v366_v3, %v370_v49  ;;  %v895_v12 = vor.u32 %v894_v4, %v891_v63  ;;  %v796_v14 = vshll.u32 %v2131_v59, 16  ;;  %v802_v15 = vshll.u32 %v2132_v1, 16 }
  0x3c   : > { %v376_v17 = vrot.slane %v375_v6, 4  ;;  %v904_v18 = vrot.slane %v902_v8, 4  ;;  %v910_v19 = vrot.slane %v908_v9, 5  ;;  %v795_v20 = vrot.slane %v793_v10, 4  ;;  %v2163_v6 = vld [vmem:[%s2740_s6 + $0xc] sm:$0xe] }
  0x3d   : > { %v896_v21 = vrot.slane %v895_v12, 4  ;;  %v798_v22 = vrot.slane %v796_v14, 5  ;;  %v804_v23 = vrot.slane %v802_v15, 5  ;;  %v806_v24 = vshrl.u32 %v2132_v1, 16  ;;  %v2164_v12 = vld [vmem:[%s2740_s6 + $0x10] sm:$0xf] }
  0x3e   : > { %v381_v25 = vsel %vm2796_vm5, %v376_v17, %v380_v62  ;;  %v905_v26 = vor.u32 %v904_v18, %v900_v5  ;;  %v812_v27 = vshll.u32 %v2133_v13, 16  ;;  %v913_v30 = vshrl.u32 %v2146_v16, 16  ;;  %v2165_v17 = vld [vmem:[%s2740_s6 + $0x14] sm:$0x1] }
  0x3f   : > { %v2085_v31 = vcombine.low %v371_v11, %v381_v25  ;;  %v901_v32 = vsel %vm2796_vm5, %v896_v21, %v900_v5  ;;  %v799_v33 = vor.u32 %v798_v22, %v795_v20  ;;  %v808_v34 = vrot.slane %v806_v24, 4  ;;  %v2177_v5 = vld [vmem:[%s2740_s6 + $0x44] sm:$0x1]  ;;  %v2178_v22 = vld [vmem:[%s2740_s6 + $0x48] sm:$0xe] }
  0x40   : > { %v906_v36 = vrot.slane %v905_v26, 4  ;;  %v814_v37 = vrot.slane %v812_v27, 5  ;;  %v915_v38 = vrot.slane %v913_v30, 4  ;;  %v916_v39 = vshll.u32 %v2146_v16, 16  ;;  %v2179_v27 = vld [vmem:[%s2740_s6 + $0x4c] sm:$0xf] }
  0x41   : > { %486 = vrot.lane.b32.xlu0 %v2085_v31, %s2638_s17  ;;  %v800_v41 = vrot.slane %v799_v33, 4  ;;  %v809_v42 = vor.u32 %v808_v34, %v804_v23  ;;  %v922_v43 = vshll.u32 %v2147_v28, 16  ;;  %v926_v44 = vshrl.u32 %v2147_v28, 16  ;;  %v2180_v28 = vld [vmem:[%s2740_s6 + $0x50] sm:$0x1] }
  0x42   : > { %v911_v46 = vsel %vm2796_vm5, %v906_v36, %v910_v19  ;;  %v918_v47 = vrot.slane %v916_v39, 5  ;;  %v932_v48 = vshll.u32 %v2148_v29, 16  ;;  %v817_v49 = vshrl.u32 %v2134_v35, 16  ;;  %v2166_v33 = vld [vmem:[%s2740_s6 + $0x18] sm:$0xe] }
  0x43   : > { %v2159_v51 = vcombine.low %v901_v32, %v911_v46  ;;  %v805_v52 = vsel %vm2796_vm5, %v800_v41, %v804_v23  ;;  %v810_v53 = vrot.slane %v809_v42, 4  ;;  %v924_v54 = vrot.slane %v922_v43, 5  ;;  %v2168_v39 = vld [vmem:[%s2740_s6 + $0x20] sm:$0x1] }
  0x44   : > { %v919_v56 = vor.u32 %v918_v47, %v915_v38  ;;  %v928_v57 = vrot.slane %v926_v44, 4  ;;  %v934_v58 = vrot.slane %v932_v48, 5  ;;  %v819_v59 = vrot.slane %v817_v49, 4  ;;  %v2167_v38 = vld [vmem:[%s2740_s6 + $0x1c] sm:$0xf] }
  0x45   : > { %1016 = vrot.lane.b32.xlu1 %v2159_v51, %s2639_s18  ;;  %v815_v60 = vsel %vm2796_vm5, %v810_v53, %v814_v37  ;;  %v820_v61 = vshll.u32 %v2134_v35, 16  ;;  %v826_v62 = vshll.u32 %v2135_v40, 16  ;;  %v830_v63 = vshrl.u32 %v2135_v40, 16  ;;  %v2241_v44 = vld [vmem:[%s2740_s6 + $0x48] sm:$0xf] }
  0x46   : > { %v2155_v1 = vcombine.low %v805_v52, %v815_v60  ;;  %v920_v2 = vrot.slane %v919_v56, 4  ;;  %v929_v3 = vor.u32 %v928_v57, %v924_v54  ;;  %v836_v4 = vshll.u32 %v2136_v45, 16  ;;  %v2242_v45 = vld [vmem:[%s2740_s6 + $0x4c] sm:$0xf] }
  0x47   : > { %v822_v8 = vrot.slane %v820_v61, 5  ;;  %v828_v9 = vrot.slane %v826_v62, 5  ;;  %v832_v10 = vrot.slane %v830_v63, 4  ;;  %v2191_v11 = vrot.slane %v2175_v50, 9 }
  0x48   : > { %1008 = vrot.lane.b32.xlu0 %v2155_v1, %s2639_s18  ;;  %v925_v13 = vsel %vm2796_vm5, %v920_v2, %v924_v54  ;;  %v930_v14 = vrot.slane %v929_v3, 4  ;;  %v838_v15 = vrot.slane %v836_v4, 5  ;;  %v1119_v16 = vrot.slane %v2176_v55, 5  ;;  %v2243_v54 = vld [vmem:[%s2740_s6 + $0x50] sm:$0x1] }
  0x49   : > { %v823_v18 = vor.u32 %v822_v8, %v819_v59  ;;  %v833_v19 = vor.u32 %v832_v10, %v828_v9  ;;  %v1122_v20 = vrot.slane %v2177_v5, 5  ;;  %v2187_v21 = vrot.slane %v2163_v6, 9  ;;  %v2229_v59 = vld [vmem:[%s2740_s6 + $0x18] sm:$0xf]  ;;  %v2230_v1 = vld [vmem:[%s2740_s6 + $0x1c] sm:$0xf] }
  0x4a   : > { %v935_v23 = vsel %vm2796_vm5, %v930_v14, %v934_v58  ;;  %v1120_v24 = vsel %vm2742_vm2, %v2191_v11, %v1119_v16  ;;  %v1121_v25 = vrot.slane %v1119_v16, 4  ;;  %v1091_v26 = vrot.slane %v2164_v12, 5  ;;  %v2231_v10 = vld [vmem:[%s2740_s6 + $0x20] sm:$0x1]  ;;  %v2244_v16 = vld [vmem:[%s2740_s6 + $0x54] sm:$0xf] }
  0x4b   : > { %v2160_v29 = vcombine.low %v925_v13, %v935_v23  ;;  %v824_v30 = vrot.slane %v823_v18, 4  ;;  %v834_v31 = vrot.slane %v833_v19, 4  ;;  %v1094_v32 = vrot.slane %v2165_v17, 5  ;;  %v2518_v17 = vld [vmem:[%s2740_s6 + $0x48] sm:$0xff]  }
  0x4c   : > { %v1123_v34 = vsel %vm2742_vm2, %v1121_v25, %v1122_v20  ;;  %v1092_v35 = vsel %vm2742_vm2, %v2187_v21, %v1091_v26  ;;  %v1093_v36 = vrot.slane %v1091_v26, 4  ;;  %v2192_v37 = vrot.slane %v2178_v22, 9  ;;  %v2245_v22 = vld [vmem:[%s2740_s6 + $0x58] sm:$0xf] }
  0x4d   : > { %1018 = vrot.lane.b32.xlu1 %v2160_v29, %s2639_s18  ;;  %v829_v40 = vsel %vm2796_vm5, %v824_v30, %v828_v9  ;;  %v839_v41 = vsel %vm2796_vm5, %v834_v31, %v838_v15  ;;  %v2199_v42 = vcombine.low %v1120_v24, %v1123_v34  ;;  %v1126_v43 = vrot.slane %v2179_v27, 5  ;;  %v2519_v27 = vld [vmem:[%s2740_s6 + $0x18] sm:$0xff]  }
  0x4e   : > { %v2156_v46 = vcombine.low %v829_v40, %v839_v41  ;;  %v1095_v47 = vsel %vm2742_vm2, %v1093_v36, %v1094_v32  ;;  %v1129_v48 = vrot.slane %v2180_v28, 5  ;;  %v2188_v49 = vrot.slane %v2166_v33, 9 }
  0x4f   : > { %v2195_v50 = vcombine.low %v1092_v35, %v1095_v47  ;;  %v1127_v51 = vsel %vm2742_vm2, %v2192_v37, %v1126_v43  ;;  %v1128_v52 = vrot.slane %v1126_v43, 4  ;;  %v1098_v53 = vrot.slane %v2167_v38, 5  ;;  %v2246_v35 = vld [vmem:[%s2740_s6 + $0x5c] sm:$0x1]  ;;  %v2232_v37 = vld [vmem:[%s2740_s6 + $0x24] sm:$0xf] }
  0x50   : > { %1010 = vrot.lane.b32.xlu0 %v2156_v46, %s2639_s18  ;;  %v1101_v55 = vrot.slane %v2168_v39, 5  ;;  %v1416_v56 = vshrl.u32 %v2241_v44, 16  ;;  %v1419_v57 = vshll.u32 %v2241_v44, 16  ;;  %v1425_v58 = vshll.u32 %v2242_v45, 16  ;;  %v2520_v38 = vld [vmem:[%s2740_s6 + $0x54] sm:$0xff]  }
  0x51   : > { %1177 = vrot.lane.b32.xlu1 %v2199_v42, %s2640_s21  ;;  %v1130_v60 = vsel %vm2742_vm2, %v1128_v52, %v1129_v48  ;;  %v1099_v61 = vsel %vm2742_vm2, %v2188_v49, %v1098_v53  ;;  %v1100_v62 = vrot.slane %v1098_v53, 4  ;;  %v1429_v63 = vshrl.u32 %v2242_v45, 16  ;;  %v2233_v43 = vld [vmem:[%s2740_s6 + $0x28] sm:$0xf]  ;;  %v2234_v48 = vld [vmem:[%s2740_s6 + $0x2c] sm:$0x1] }
  0x52   : > { %v2200_v2 = vcombine.low %v1127_v51, %v1130_v60  ;;  %v1418_v3 = vrot.slane %v1416_v56, 4  ;;  %v1421_v4 = vrot.slane %v1419_v57, 5  ;;  %v1427_v5 = vrot.slane %v1425_v58, 5  ;;  %v2273_v53 = vld [vmem:[%s2740_s6 + $0x48] sm:$0xe] }
  0x53   : > { %v1102_v6 = vsel %vm2742_vm2, %v1100_v62, %v1101_v55  ;;  %v1431_v8 = vrot.slane %v1429_v63, 4  ;;  %v1435_v9 = vshll.u32 %v2243_v54, 16  ;;  %v1320_v11 = vshrl.u32 %v2229_v59, 16  ;;  %v2521_v54 = vld [vmem:[%s2740_s6 + $0x24] sm:$0xff]  }
  0x54   : > { %1169 = vrot.lane.b32.xlu0 %v2195_v50, %s2640_s21  ;;  %v2196_v12 = vcombine.low %v1099_v61, %v1102_v6  ;;  %v1422_v13 = vor.u32 %v1421_v4, %v1418_v3  ;;  %v1323_v14 = vshll.u32 %v2229_v59, 16  ;;  %v1329_v15 = vshll.u32 %v2230_v1, 16  ;;  %v2274_v59 = vld [vmem:[%s2740_s6 + $0x4c] sm:$0xf]  ;;  %v2261_v6 = vld [vmem:[%s2740_s6 + $0x18] sm:$0xe] }
  0x55   : > { %1179 = vrot.lane.b32.xlu1 %v2200_v2, %s2640_s21  ;;  %v1432_v18 = vor.u32 %v1431_v8, %v1427_v5  ;;  %v1437_v19 = vrot.slane %v1435_v9, 5  ;;  %v1322_v20 = vrot.slane %v1320_v11, 4  ;;  %v1333_v21 = vshrl.u32 %v2230_v1, 16  ;;  %v2275_v1 = vld [vmem:[%s2740_s6 + $0x50] sm:$0x1] }
  0x56   : > { %v1423_v23 = vrot.slane %v1422_v13, 4  ;;  %v1325_v24 = vrot.slane %v1323_v14, 5  ;;  %v1331_v25 = vrot.slane %v1329_v15, 5  ;;  %v1339_v26 = vshll.u32 %v2231_v10, 16  ;;  %v2262_v8 = vld [vmem:[%s2740_s6 + $0x1c] sm:$0xf] }
  0x57   : > { %v1433_v28 = vrot.slane %v1432_v18, 4  ;;  %v1335_v29 = vrot.slane %v1333_v21, 4  ;;  %v1440_v30 = vshrl.u32 %v2244_v16, 16  ;;  %v1443_v31 = vshll.u32 %v2244_v16, 16 }
  0x58   : > { %1171 = vrot.lane.b32.xlu0 %v2196_v12, %s2640_s21  ;;  %v1428_v32 = vsel %vm2796_vm5, %v1423_v23, %v1427_v5  ;;  %v1326_v33 = vor.u32 %v1325_v24, %v1322_v20  ;;  %v1341_v34 = vrot.slane %v1339_v26, 5  ;;  %v1449_v36 = vshll.u32 %v2245_v22, 16 }
  0x59   : > { %1270 = vrot.lane.b32.xlu1 %v2518_v17, %s2641_s24  ;;  %v1438_v39 = vsel %vm2796_vm5, %v1433_v28, %v1437_v19  ;;  %v1336_v40 = vor.u32 %v1335_v29, %v1331_v25  ;;  %v1442_v41 = vrot.slane %v1440_v30, 4  ;;  %v1445_v42 = vrot.slane %v1443_v31, 5  ;;  %v2263_v17 = vld [vmem:[%s2740_s6 + $0x20] sm:$0x1] }
  0x5a   : > { %v2257_v44 = vcombine.low %v1428_v32, %v1438_v39  ;;  %v1327_v45 = vrot.slane %v1326_v33, 4  ;;  %v1451_v46 = vrot.slane %v1449_v36, 5  ;;  %v1453_v47 = vshrl.u32 %v2245_v22, 16  ;;  %v253_v22 = vld [vmem:[%s2740_s6 + $0x48] sm:$0xf] }
  0x5b   : > { %v1337_v49 = vrot.slane %v1336_v40, 4  ;;  %v1446_v50 = vor.u32 %v1445_v42, %v1442_v41  ;;  %v1459_v51 = vshll.u32 %v2246_v35, 16  ;;  %v1344_v52 = vshrl.u32 %v2232_v37, 16  ;;  %v255_v32 = vld [vmem:[%s2740_s6 + $0x50] sm:$0x1] }
  0x5c   : > { %1262 = vrot.lane.b32.xlu0 %v2519_v27, %s2641_s24  ;;  %v1332_v55 = vsel %vm2796_vm5, %v1327_v45, %v1331_v25  ;;  %v1455_v56 = vrot.slane %v1453_v47, 4  ;;  %v1347_v57 = vshll.u32 %v2232_v37, 16  ;;  %v1353_v58 = vshll.u32 %v2233_v43, 16  ;;  %v254_v27 = vld [vmem:[%s2740_s6 + $0x4c] sm:$0xf] }
  0x5d   : > { %1272 = vrot.lane.b32.xlu1 %v2520_v38, %s2641_s24  ;;  %v1342_v60 = vsel %vm2796_vm5, %v1337_v49, %v1341_v34  ;;  %v1447_v61 = vrot.slane %v1446_v50, 4  ;;  %v1461_v62 = vrot.slane %v1459_v51, 5  ;;  %v1346_v63 = vrot.slane %v1344_v52, 4  ;;  %v241_v37 = vld [vmem:[%s2740_s6 + $0x18] sm:$0xf] }
  0x5e   : > { %v2253_v2 = vcombine.low %v1332_v55, %v1342_v60  ;;  %v1456_v3 = vor.u32 %v1455_v56, %v1451_v46  ;;  %v1349_v4 = vrot.slane %v1347_v57, 5  ;;  %v1355_v5 = vrot.slane %v1353_v58, 5  ;;  %v242_v38 = vld [vmem:[%s2740_s6 + $0x1c] sm:$0xf] }
  0x5f   : > { %v1452_v9 = vsel %vm2796_vm5, %v1447_v61, %v1451_v46  ;;  %v1357_v10 = vshrl.u32 %v2233_v43, 16  ;;  %v1363_v11 = vshll.u32 %v2234_v48, 16  ;;  %v2289_v12 = vrot.slane %v2273_v53, 9  ;;  %v243_v43 = vld [vmem:[%s2740_s6 + $0x20] sm:$0x1] }
  0x60   : > { %1264 = vrot.lane.b32.xlu0 %v2521_v54, %s2641_s24  ;;  %v1457_v13 = vrot.slane %v1456_v3, 4  ;;  %v1350_v14 = vor.u32 %v1349_v4, %v1346_v63  ;;  %v1646_v15 = vrot.slane %v2274_v59, 5  ;;  %v1649_v16 = vrot.slane %v2275_v1, 5  ;;  %v2276_v48 = vld [vmem:[%s2740_s6 + $0x54] sm:$0xe] }
  0x61   : > { %1543 = vrot.lane.b32.xlu1 %v2257_v44, %s2642_s25  ;;  %v1359_v18 = vrot.slane %v1357_v10, 4  ;;  %v1365_v19 = vrot.slane %v1363_v11, 5  ;;  %v2285_v20 = vrot.slane %v2261_v6, 9  ;;  %v1618_v21 = vrot.slane %v2262_v8, 5  ;;  %v2277_v53 = vld [vmem:[%s2740_s6 + $0x58] sm:$0xf] }
  0x62   : > { %v1462_v23 = vsel %vm2796_vm5, %v1457_v13, %v1461_v62  ;;  %v1351_v24 = vrot.slane %v1350_v14, 4  ;;  %v1647_v25 = vsel %vm2742_vm2, %v2289_v12, %v1646_v15  ;;  %v1648_v26 = vrot.slane %v1646_v15, 4  ;;  %v2278_v54 = vld [vmem:[%s2740_s6 + $0x5c] sm:$0x1]  ;;  %v2264_v59 = vld [vmem:[%s2740_s6 + $0x24] sm:$0xe] }
  0x63   : > { %v2258_v28 = vcombine.low %v1452_v9, %v1462_v23  ;;  %v1360_v29 = vor.u32 %v1359_v18, %v1355_v5  ;;  %v1619_v30 = vsel %vm2742_vm2, %v2285_v20, %v1618_v21  ;;  %v1620_v31 = vrot.slane %v1618_v21, 4  ;;  %v2265_v1 = vld [vmem:[%s2740_s6 + $0x28] sm:$0xf]  ;;  %v2266_v6 = vld [vmem:[%s2740_s6 + $0x2c] sm:$0x1]  ;;  %v2536_v21 = vld [vmem:[%s3345_s1] sm:$0xff]  }
  0x64   : > { %1535 = vrot.lane.b32.xlu0 %v2253_v2, %s2642_s25  ;;  %v1356_v33 = vsel %vm2796_vm5, %v1351_v24, %v1355_v5  ;;  %v1650_v34 = vsel %vm2742_vm2, %v1648_v26, %v1649_v16  ;;  %v1621_v35 = vrot.slane %v2263_v17, 5  ;;  %v407_v36 = vshrl.u32 %v253_v22, 16  ;;  %v256_v20 = vld [vmem:[%s2740_s6 + $0x54] sm:$0xf]  ;;  %2407 = vmatprep.subr.bf16.mxu0 %v2536_v21 }
  0x65   : > { %1545 = vrot.lane.b32.xlu1 %v2258_v28, %s2642_s25  ;;  %v1361_v39 = vrot.slane %v1360_v29, 4  ;;  %v2297_v40 = vcombine.low %v1647_v25, %v1650_v34  ;;  %v410_v41 = vshll.u32 %v253_v22, 16  ;;  %v416_v42 = vshll.u32 %v254_v27, 16  ;;  %2427 = vmatprep.subr.bf16.mxu1 %v2536_v21  ;;  %v258_v34 = vld [vmem:[%s2740_s6 + $0x5c] sm:$0x1] }
  0x66   : > { %v1622_v44 = vsel %vm2742_vm2, %v1620_v31, %v1621_v35  ;;  %v409_v45 = vrot.slane %v407_v36, 4  ;;  %v420_v46 = vshrl.u32 %v254_v27, 16  ;;  %v426_v47 = vshll.u32 %v255_v32, 16  ;;  %2408 = vmatpush3.bf16.msra.mxu0 %v2536_v21  ;;  %2429 = vmatpush3.bf16.msra.mxu1 %v2536_v21  ;;  %v534_v21 = vld [vmem:[%s2740_s6 + $0x5c] sm:$0x1] }
  0x67   : > { %v1366_v49 = vsel %vm2796_vm5, %v1361_v39, %v1365_v19  ;;  %v2293_v50 = vcombine.low %v1619_v30, %v1622_v44  ;;  %v412_v51 = vrot.slane %v410_v41, 5  ;;  %v418_v52 = vrot.slane %v416_v42, 5  ;;  %v257_v30 = vld [vmem:[%s2740_s6 + $0x58] sm:$0xf]  ;;  %v245_v41 = vld [vmem:[%s2740_s6 + $0x28] sm:$0xf] }
  0x68   : > { %v2254_v55 = vcombine.low %v1356_v33, %v1366_v49  ;;  %v422_v56 = vrot.slane %v420_v46, 4  ;;  %v428_v57 = vrot.slane %v426_v47, 5  ;;  %v311_v58 = vshrl.u32 %v241_v37, 16  ;;  %v246_v46 = vld [vmem:[%s2740_s6 + $0x2c] sm:$0x1] }
  0x69   : > { %1704 = vrot.lane.b32.xlu1 %v2297_v40, %s2643_s26  ;;  %v413_v60 = vor.u32 %v412_v51, %v409_v45  ;;  %v314_v61 = vshll.u32 %v241_v37, 16  ;;  %v320_v62 = vshll.u32 %v242_v38, 16  ;;  %v324_v63 = vshrl.u32 %v242_v38, 16  ;;  %v244_v40 = vld [vmem:[%s2740_s6 + $0x24] sm:$0xf] }
  0x6a   : > { %1537 = vrot.lane.b32.xlu0 %v2254_v55, %s2642_s25  ;;  %v423_v2 = vor.u32 %v422_v56, %v418_v52  ;;  %v313_v3 = vrot.slane %v311_v58, 4  ;;  %v330_v4 = vshll.u32 %v243_v43, 16  ;;  %v2290_v5 = vrot.slane %v2276_v48, 9  ;;  %v529_v47 = vld [vmem:[%s2740_s6 + $0x48] sm:$0xe] }
  0x6b   : > { %v414_v8 = vrot.slane %v413_v60, 4  ;;  %v316_v9 = vrot.slane %v314_v61, 5  ;;  %v322_v10 = vrot.slane %v320_v62, 5  ;;  %v326_v11 = vrot.slane %v324_v63, 4  ;;  %v517_v62 = vld [vmem:[%s2740_s6 + $0x18] sm:$0xe] }
  0x6c   : > { %v424_v12 = vrot.slane %v423_v2, 4  ;;  %v332_v13 = vrot.slane %v330_v4, 5  ;;  %v1653_v14 = vrot.slane %v2277_v53, 5  ;;  %v1656_v15 = vrot.slane %v2278_v54, 5  ;;  %v518_v4 = vld [vmem:[%s2740_s6 + $0x1c] sm:$0xf] }
  0x6d   : > { %v419_v16 = vsel %vm2796_vm5, %v414_v8, %v418_v52  ;;  %v317_v17 = vor.u32 %v316_v9, %v313_v3  ;;  %v327_v18 = vor.u32 %v326_v11, %v322_v10  ;;  %v2286_v19 = vrot.slane %v2264_v59, 9  ;;  %v530_v52 = vld [vmem:[%s2740_s6 + $0x4c] sm:$0xf] }
  0x6e   : > { %1696 = vrot.lane.b32.xlu0 %v2293_v50, %s2643_s26  ;;  %v429_v22 = vsel %vm2796_vm5, %v424_v12, %v428_v57  ;;  %v1654_v23 = vsel %vm2742_vm2, %v2290_v5, %v1653_v14  ;;  %v1655_v24 = vrot.slane %v1653_v14, 4  ;;  %v1625_v25 = vrot.slane %v2265_v1, 5  ;;  %v531_v57 = vld [vmem:[%s2740_s6 + $0x50] sm:$0x1] }
  0x6f   : > { %v2087_v26 = vcombine.low %v419_v16, %v429_v22  ;;  %v318_v27 = vrot.slane %v317_v17, 4  ;;  %v328_v28 = vrot.slane %v327_v18, 4  ;;  %v1628_v29 = vrot.slane %v2266_v6, 5 }
  0x70   : > { %v1657_v31 = vsel %vm2742_vm2, %v1655_v24, %v1656_v15  ;;  %v1626_v32 = vsel %vm2742_vm2, %v2286_v19, %v1625_v25  ;;  %v1627_v33 = vrot.slane %v1625_v25, 4  ;;  %v431_v35 = vshrl.u32 %v256_v20, 16  ;;  %v532_v15 = vld [vmem:[%s2740_s6 + $0x54] sm:$0xe] }
  0x71   : > { %490 = vrot.lane.b32.xlu1 %v2087_v26, %s2638_s17  ;;  %v323_v36 = vsel %vm2796_vm5, %v318_v27, %v322_v10  ;;  %v333_v37 = vsel %vm2796_vm5, %v328_v28, %v332_v13  ;;  %v2298_v38 = vcombine.low %v1654_v23, %v1657_v31  ;;  %v434_v39 = vshll.u32 %v256_v20, 16  ;;  %v519_v10 = vld [vmem:[%s2740_s6 + $0x20] sm:$0x1]  ;;  %v533_v20 = vld [vmem:[%s2740_s6 + $0x58] sm:$0xf] }
  0x72   : > { %v2083_v42 = vcombine.low %v323_v36, %v333_v37  ;;  %v1629_v43 = vsel %vm2742_vm2, %v1627_v33, %v1628_v29  ;;  %v433_v44 = vrot.slane %v431_v35, 4  ;;  %v440_v45 = vshll.u32 %v257_v30, 16  ;;  %v520_v26 = vld [vmem:[%s2740_s6 + $0x24] sm:$0xe]  ;;  %v521_v31 = vld [vmem:[%s2740_s6 + $0x28] sm:$0xf] }
  0x73   : > { %v2294_v48 = vcombine.low %v1626_v32, %v1629_v43  ;;  %v436_v49 = vrot.slane %v434_v39, 5  ;;  %v444_v50 = vshrl.u32 %v257_v30, 16  ;;  %v450_v51 = vshll.u32 %v258_v34, 16  ;;  %v522_v36 = vld [vmem:[%s2740_s6 + $0x2c] sm:$0x1] }
  0x74   : > { %482 = vrot.lane.b32.xlu0 %v2083_v42, %s2638_s17  ;;  %v442_v53 = vrot.slane %v440_v45, 5  ;;  %v335_v54 = vshrl.u32 %v244_v40, 16  ;;  %v338_v55 = vshll.u32 %v244_v40, 16  ;;  %v344_v56 = vshll.u32 %v245_v41, 16  ;;  %v2149_v37 = vld [vmem:[%s2740_s6 + $0x54] sm:$0xf] }
  0x75   : > { %1706 = vrot.lane.b32.xlu1 %v2298_v38, %s2643_s26  ;;  %v437_v58 = vor.u32 %v436_v49, %v433_v44  ;;  %v446_v59 = vrot.slane %v444_v50, 4  ;;  %v452_v60 = vrot.slane %v450_v51, 5  ;;  %v348_v61 = vshrl.u32 %v245_v41, 16  ;;  %v2150_v38 = vld [vmem:[%s2740_s6 + $0x58] sm:$0xf] }
  0x76   : > { %v337_v63 = vrot.slane %v335_v54, 4  ;;  %v340_v1 = vrot.slane %v338_v55, 5  ;;  %v346_v2 = vrot.slane %v344_v56, 5  ;;  %v354_v3 = vshll.u32 %v246_v46, 16  ;;  %v2151_v43 = vld [vmem:[%s2740_s6 + $0x5c] sm:$0x1] }
  0x77   : > { %v438_v5 = vrot.slane %v437_v58, 4  ;;  %v447_v6 = vor.u32 %v446_v59, %v442_v53  ;;  %v350_v8 = vrot.slane %v348_v61, 4  ;;  %v2095_v9 = vrot.slane %v529_v47, 9 }
  0x78   : > { %1698 = vrot.lane.b32.xlu0 %v2294_v48, %s2643_s26  ;;  %v341_v11 = vor.u32 %v340_v1, %v337_v63  ;;  %v356_v12 = vrot.slane %v354_v3, 5  ;;  %v606_v13 = vrot.slane %v530_v52, 5  ;;  %v609_v14 = vrot.slane %v531_v57, 5  ;;  %v2137_v52 = vld [vmem:[%s2740_s6 + $0x24] sm:$0xf] }
  0x79   : > { %v443_v16 = vsel %vm2796_vm5, %v438_v5, %v442_v53  ;;  %v448_v17 = vrot.slane %v447_v6, 4  ;;  %v351_v18 = vor.u32 %v350_v8, %v346_v2  ;;  %v2091_v19 = vrot.slane %v517_v62, 9  ;;  %v2138_v53 = vld [vmem:[%s2740_s6 + $0x28] sm:$0xf]  ;;  %v2139_v3 = vld [vmem:[%s2740_s6 + $0x2c] sm:$0x1] }
  0x7a   : > { %v342_v22 = vrot.slane %v341_v11, 4  ;;  %v607_v23 = vsel %vm2742_vm2, %v2095_v9, %v606_v13  ;;  %v608_v24 = vrot.slane %v606_v13, 4  ;;  %v578_v25 = vrot.slane %v518_v4, 5  ;;  %v2152_v9 = vld [vmem:[%s2740_s6 + $0x60] sm:$0xf] }
  0x7b   : > { %v453_v27 = vsel %vm2796_vm5, %v448_v17, %v452_v60  ;;  %v352_v28 = vrot.slane %v351_v18, 4  ;;  %v581_v29 = vrot.slane %v519_v10, 5  ;;  %v2096_v30 = vrot.slane %v532_v15, 9  ;;  %v2153_v18 = vld [vmem:[%s2740_s6 + $0x64] sm:$0xf] }
  0x7c   : > { %v2088_v32 = vcombine.low %v443_v16, %v453_v27  ;;  %v347_v33 = vsel %vm2796_vm5, %v342_v22, %v346_v2  ;;  %v610_v34 = vsel %vm2742_vm2, %v608_v24, %v609_v14  ;;  %v579_v35 = vsel %vm2742_vm2, %v2091_v19, %v578_v25  ;;  %v2522_v19 = vld [vmem:[%s2740_s6 + $0x54] sm:$0xff]  }
  0x7d   : > { %v357_v39 = vsel %vm2796_vm5, %v352_v28, %v356_v12  ;;  %v2103_v40 = vcombine.low %v607_v23, %v610_v34  ;;  %v580_v41 = vrot.slane %v578_v25, 4  ;;  %v613_v42 = vrot.slane %v533_v20, 5  ;;  %v2154_v28 = vld [vmem:[%s2740_s6 + $0x68] sm:$0x1]  ;;  %v2140_v34 = vld [vmem:[%s2740_s6 + $0x30] sm:$0xf] }
  0x7e   : > { %492 = vrot.lane.b32.xlu1 %v2088_v32, %s2638_s17  ;;  %v2084_v44 = vcombine.low %v347_v33, %v357_v39  ;;  %v616_v45 = vrot.slane %v534_v21, 5  ;;  %v2092_v46 = vrot.slane %v520_v26, 9  ;;  %v585_v47 = vrot.slane %v521_v31, 5  ;;  %v2141_v39 = vld [vmem:[%s2740_s6 + $0x34] sm:$0xf] }
  0x7f   : > { %v582_v48 = vsel %vm2742_vm2, %v580_v41, %v581_v29  ;;  %v614_v49 = vsel %vm2742_vm2, %v2096_v30, %v613_v42  ;;  %v615_v50 = vrot.slane %v613_v42, 4  ;;  %v588_v51 = vrot.slane %v522_v36, 5  ;;  %v2523_v29 = vld [vmem:[%s2740_s6 + $0x24] sm:$0xff]   ;;  %v2525_v41 = vld [vmem:[%s2740_s6 + $0x30] sm:$0xff]  }
  0x80   : > { %484 = vrot.lane.b32.xlu0 %v2084_v44, %s2638_s17  ;;  %v2099_v54 = vcombine.low %v579_v35, %v582_v48  ;;  %v586_v55 = vsel %vm2742_vm2, %v2092_v46, %v585_v47  ;;  %v587_v56 = vrot.slane %v585_v47, 4  ;;  %v937_v57 = vshrl.u32 %v2149_v37, 16 }
  0x81   : > { %v617_v58 = vsel %vm2742_vm2, %v615_v50, %v616_v45  ;;  %v940_v59 = vshll.u32 %v2149_v37, 16  ;;  %v946_v60 = vshll.u32 %v2150_v38, 16  ;;  %v950_v61 = vshrl.u32 %v2150_v38, 16 }
  0x82   : > { %654 = vrot.lane.b32.xlu1 %v2103_v40, %s2637_s8  ;;  %v2104_v62 = vcombine.low %v614_v49, %v617_v58  ;;  %v589_v63 = vsel %vm2742_vm2, %v587_v56, %v588_v51  ;;  %v939_v1 = vrot.slane %v937_v57, 4  ;;  %v956_v2 = vshll.u32 %v2151_v43, 16  ;;  %v2524_v40 = vld [vmem:[%s2740_s6 + $0x60] sm:$0xff]   ;;  %v2142_v49 = vld [vmem:[%s2740_s6 + $0x38] sm:$0x1] }
  0x83   : > { %v2100_v4 = vcombine.low %v586_v55, %v589_v63  ;;  %v942_v5 = vrot.slane %v940_v59, 5  ;;  %v948_v6 = vrot.slane %v946_v60, 5  ;;  %v952_v8 = vrot.slane %v950_v61, 4  ;;  %v2181_v55 = vld [vmem:[%s2740_s6 + $0x54] sm:$0xe] }
  0x84   : > { %646 = vrot.lane.b32.xlu0 %v2099_v54, %s2637_s8  ;;  %v958_v10 = vrot.slane %v956_v2, 5  ;;  %v841_v11 = vshrl.u32 %v2137_v52, 16  ;;  %v844_v12 = vshll.u32 %v2137_v52, 16  ;;  %v850_v13 = vshll.u32 %v2138_v53, 16  ;;  %v2182_v56 = vld [vmem:[%s2740_s6 + $0x58] sm:$0xf] }
  0x85   : > { %v943_v14 = vor.u32 %v942_v5, %v939_v1  ;;  %v953_v15 = vor.u32 %v952_v8, %v948_v6  ;;  %v854_v16 = vshrl.u32 %v2138_v53, 16  ;;  %v860_v17 = vshll.u32 %v2139_v3, 16  ;;  %v2183_v61 = vld [vmem:[%s2740_s6 + $0x5c] sm:$0x1]  ;;  %v2171_v5 = vld [vmem:[%s2740_s6 + $0x2c] sm:$0x1] }
  0x86   : > { %656 = vrot.lane.b32.xlu1 %v2104_v62, %s2637_s8  ;;  %v843_v20 = vrot.slane %v841_v11, 4  ;;  %v846_v21 = vrot.slane %v844_v12, 5  ;;  %v852_v22 = vrot.slane %v850_v13, 5  ;;  %v961_v23 = vshrl.u32 %v2152_v9, 16  ;;  %v2169_v62 = vld [vmem:[%s2740_s6 + $0x24] sm:$0xe] }
  0x87   : > { %v944_v24 = vrot.slane %v943_v14, 4  ;;  %v954_v25 = vrot.slane %v953_v15, 4  ;;  %v856_v26 = vrot.slane %v854_v16, 4  ;;  %v862_v27 = vrot.slane %v860_v17, 5  ;;  %v2184_v11 = vld [vmem:[%s2740_s6 + $0x60] sm:$0xe] }
  0x88   : > { %648 = vrot.lane.b32.xlu0 %v2100_v4, %s2637_s8  ;;  %v847_v30 = vor.u32 %v846_v21, %v843_v20  ;;  %v963_v31 = vrot.slane %v961_v23, 4  ;;  %v964_v32 = vshll.u32 %v2152_v9, 16  ;;  %v970_v33 = vshll.u32 %v2153_v18, 16  ;;  %v2170_v4 = vld [vmem:[%s2740_s6 + $0x28] sm:$0xf]  ;;  %s2329_s8 = sshll.u32 %s2622_s13, 5 }
  0x89   : > { %v949_v35 = vsel %vm2796_vm5, %v944_v24, %v948_v6  ;;  %v959_v36 = vsel %vm2796_vm5, %v954_v25, %v958_v10  ;;  %v857_v37 = vor.u32 %v856_v26, %v852_v22  ;;  %v974_v38 = vshrl.u32 %v2153_v18, 16  ;;  %v2185_v16 = vld [vmem:[%s2740_s6 + $0x64] sm:$0xf]  ;;  %v2186_v17 = vld [vmem:[%s2740_s6 + $0x68] sm:$0x1] }
  0x8a   : > { %747 = vrot.lane.b32.xlu1 %v2522_v19, %s2636_s7  ;;  %v2161_v42 = vcombine.low %v949_v35, %v959_v36  ;;  %v848_v43 = vrot.slane %v847_v30, 4  ;;  %v966_v44 = vrot.slane %v964_v32, 5  ;;  %v972_v45 = vrot.slane %v970_v33, 5 }
  0x8b   : > { %v858_v46 = vrot.slane %v857_v37, 4  ;;  %v976_v47 = vrot.slane %v974_v38, 4  ;;  %v980_v48 = vshll.u32 %v2154_v28, 16  ;;  %v865_v50 = vshrl.u32 %v2140_v34, 16  ;;  %v2173_v28 = vld [vmem:[%s2740_s6 + $0x34] sm:$0xf] }
  0x8c   : > { %739 = vrot.lane.b32.xlu0 %v2523_v29, %s2636_s7  ;;  %v853_v51 = vsel %vm2796_vm5, %v848_v43, %v852_v22  ;;  %v967_v52 = vor.u32 %v966_v44, %v963_v31  ;;  %v868_v53 = vshll.u32 %v2140_v34, 16  ;;  %v874_v54 = vshll.u32 %v2141_v39, 16  ;;  %v2172_v22 = vld [vmem:[%s2740_s6 + $0x30] sm:$0xe]  ;;  %v2174_v29 = vld [vmem:[%s2740_s6 + $0x38] sm:$0x1] }
  0x8d   : > { %v863_v57 = vsel %vm2796_vm5, %v858_v46, %v862_v27  ;;  %v977_v58 = vor.u32 %v976_v47, %v972_v45  ;;  %v982_v59 = vrot.slane %v980_v48, 5  ;;  %v867_v60 = vrot.slane %v865_v50, 4  ;;  %v2247_v34 = vld [vmem:[%s2740_s6 + $0x60] sm:$0xf]  ;;  %v2248_v43 = vld [vmem:[%s2740_s6 + $0x64] sm:$0xf] }
  0x8e   : > { %749 = vrot.lane.b32.xlu1 %v2524_v40, %s2636_s7  ;;  %v2157_v63 = vcombine.low %v853_v51, %v863_v57  ;;  %v968_v1 = vrot.slane %v967_v52, 4  ;;  %v870_v2 = vrot.slane %v868_v53, 5  ;;  %v876_v3 = vrot.slane %v874_v54, 5  ;;  %v2249_v44 = vld [vmem:[%s2740_s6 + $0x68] sm:$0x1] }
  0x8f   : > { %v978_v6 = vrot.slane %v977_v58, 4  ;;  %v878_v8 = vshrl.u32 %v2141_v39, 16  ;;  %v884_v9 = vshll.u32 %v2142_v49, 16  ;;  %v2193_v10 = vrot.slane %v2181_v55, 9  ;;  %v2236_v51 = vld [vmem:[%s2740_s6 + $0x34] sm:$0xf] }
  0x90   : > { %741 = vrot.lane.b32.xlu0 %v2525_v41, %s2636_s7  ;;  %v973_v12 = vsel %vm2796_vm5, %v968_v1, %v972_v45  ;;  %v871_v13 = vor.u32 %v870_v2, %v867_v60  ;;  %v1133_v14 = vrot.slane %v2182_v56, 5  ;;  %v1136_v15 = vrot.slane %v2183_v61, 5  ;;  %v2235_v45 = vld [vmem:[%s2740_s6 + $0x30] sm:$0xf]  ;;  %v2237_v2 = vld [vmem:[%s2740_s6 + $0x38] sm:$0x1] }
  0x91   : > { %v983_v18 = vsel %vm2796_vm5, %v978_v6, %v982_v59  ;;  %v880_v19 = vrot.slane %v878_v8, 4  ;;  %v886_v20 = vrot.slane %v884_v9, 5  ;;  %v2189_v21 = vrot.slane %v2169_v62, 9  ;;  %v3069_v23 = vpop.permute.xlu1 %743  ;;  %v3087_v46 = vpop.permute.xlu0 %735  ;;  %v2251_v9 = vld [vmem:[%s2740_s6 + $0x70] sm:$0xf]  ;;  %s2328_s7 = sshll.u32 %s2618_s12, 4 }
  0x92   : > { %1020 = vrot.lane.b32.xlu1 %v2161_v42, %s2639_s18  ;;  %v2162_v24 = vcombine.low %v973_v12, %v983_v18  ;;  %v872_v25 = vrot.slane %v871_v13, 4  ;;  %v1134_v26 = vsel %vm2742_vm2, %v2193_v10, %v1133_v14  ;;  %v1135_v27 = vrot.slane %v1133_v14, 4  ;;  %s1974_s17 = sadd.s32 %s2329_s8, %s2328_s7 }
  0x93   : > { %v881_v30 = vor.u32 %v880_v19, %v876_v3  ;;  %v1105_v31 = vrot.slane %v2170_v4, 5  ;;  %v1108_v32 = vrot.slane %v2171_v5, 5  ;;  %v2194_v33 = vrot.slane %v2184_v11, 9 }
  0x94   : > { %1012 = vrot.lane.b32.xlu0 %v2157_v63, %s2639_s18  ;;  %v877_v35 = vsel %vm2796_vm5, %v872_v25, %v876_v3  ;;  %v1137_v36 = vsel %vm2742_vm2, %v1135_v27, %v1136_v15  ;;  %v1140_v37 = vrot.slane %v2185_v16, 5  ;;  %v1143_v38 = vrot.slane %v2186_v17, 5  ;;  %v2250_v3 = vld [vmem:[%s2740_s6 + $0x6c] sm:$0xf]  ;;  %v2526_v25 = vld [vmem:[%s2740_s6 + $0x60] sm:$0xff]  }
  0x95   : > { %v882_v39 = vrot.slane %v881_v30, 4  ;;  %v2201_v40 = vcombine.low %v1134_v26, %v1137_v36  ;;  %v1106_v41 = vsel %vm2742_vm2, %v2189_v21, %v1105_v31  ;;  %v1107_v42 = vrot.slane %v1105_v31, 4  ;;  %v3097_v56 = vpop.permute.xlu1 %745  ;;  %v3110_v14 = vpop.permute.xlu0 %737 }
  0x96   : > { %1022 = vrot.lane.b32.xlu1 %v2162_v24, %s2639_s18  ;;  %v1141_v47 = vsel %vm2742_vm2, %v2194_v33, %v1140_v37  ;;  %v1142_v48 = vrot.slane %v1140_v37, 4  ;;  %v2190_v49 = vrot.slane %v2172_v22, 9  ;;  %v1112_v50 = vrot.slane %v2173_v28, 5 }
  0x97   : > { %v887_v52 = vsel %vm2796_vm5, %v882_v39, %v886_v20  ;;  %v1109_v53 = vsel %vm2742_vm2, %v1107_v42, %v1108_v32  ;;  %v1115_v54 = vrot.slane %v2174_v29, 5  ;;  %v1464_v55 = vshrl.u32 %v2247_v34, 16  ;;  %v2252_v32 = vld [vmem:[%s2740_s6 + $0x74] sm:$0x1]  ;;  %v2238_v39 = vld [vmem:[%s2740_s6 + $0x3c] sm:$0xf] }
  0x98   : > { %v2158_v57 = vcombine.low %v877_v35, %v887_v52  ;;  %v2197_v58 = vcombine.low %v1106_v41, %v1109_v53  ;;  %v1144_v59 = vsel %vm2742_vm2, %v1142_v48, %v1143_v38  ;;  %v1113_v60 = vsel %vm2742_vm2, %v2190_v49, %v1112_v50  ;;  %v2239_v52 = vld [vmem:[%s2740_s6 + $0x40] sm:$0xf] }
  0x99   : > { %v2202_v61 = vcombine.low %v1141_v47, %v1144_v59  ;;  %v1114_v62 = vrot.slane %v1112_v50, 4  ;;  %v1466_v63 = vrot.slane %v1464_v55, 4  ;;  %v1467_v1 = vshll.u32 %v2247_v34, 16  ;;  %v3112_v24 = vpop.permute.xlu1 %650  ;;  %v2528_v47 = vld [vmem:[%s2740_s6 + $0x6c] sm:$0xff]  }
  0x9a   : > { %1014 = vrot.lane.b32.xlu0 %v2158_v57, %s2639_s18  ;;  %1181 = vrot.lane.b32.xlu1 %v2201_v40, %s2640_s21  ;;  %v1473_v4 = vshll.u32 %v2248_v43, 16  ;;  %v1477_v5 = vshrl.u32 %v2248_v43, 16  ;;  %v1483_v6 = vshll.u32 %v2249_v44, 16  ;;  %v1368_v8 = vshrl.u32 %v2235_v45, 16  ;;  %v2527_v40 = vld [vmem:[%s2740_s6 + $0x30] sm:$0xff]   ;;  %s2330_s18 = sshll.u32 %s1974_s17, 6 }
  0x9b   : > { %v1116_v10 = vsel %vm2742_vm2, %v1114_v62, %v1115_v54  ;;  %v1469_v11 = vrot.slane %v1467_v1, 5  ;;  %v1371_v12 = vshll.u32 %v2235_v45, 16  ;;  %v1377_v13 = vshll.u32 %v2236_v51, 16  ;;  %v3122_v45 = vpop.permute.xlu0 %642  ;;  %v2240_v57 = vld [vmem:[%s2740_s6 + $0x44] sm:$0x1] }
  0x9c   : > { %v2198_v15 = vcombine.low %v1113_v60, %v1116_v10  ;;  %v1475_v16 = vrot.slane %v1473_v4, 5  ;;  %v1479_v17 = vrot.slane %v1477_v5, 4  ;;  %v1485_v18 = vrot.slane %v1483_v6, 5  ;;  %v2529_v60 = vld [vmem:[%s2740_s6 + $0x3c] sm:$0xff]  }
  0x9d   : > { %v1470_v19 = vor.u32 %v1469_v11, %v1466_v63  ;;  %v1370_v20 = vrot.slane %v1368_v8, 4  ;;  %v1373_v21 = vrot.slane %v1371_v12, 5  ;;  %v1379_v22 = vrot.slane %v1377_v13, 5  ;;  %v3133_v59 = vpop.permute.xlu1 %652  ;;  %v2280_v8 = vld [vmem:[%s2740_s6 + $0x64] sm:$0xf] }
  0x9e   : > { %1173 = vrot.lane.b32.xlu0 %v2197_v58, %s2640_s21  ;;  %1183 = vrot.lane.b32.xlu1 %v2202_v61, %s2640_s21  ;;  %v1480_v26 = vor.u32 %v1479_v17, %v1475_v16  ;;  %v1381_v27 = vshrl.u32 %v2236_v51, 16  ;;  %v1387_v28 = vshll.u32 %v2237_v2, 16  ;;  %v1488_v29 = vshrl.u32 %v2250_v3, 16  ;;  %v2279_v2 = vld [vmem:[%s2740_s6 + $0x60] sm:$0xe] }
  0x9f   : > { %v1471_v30 = vrot.slane %v1470_v19, 4  ;;  %v1374_v31 = vor.u32 %v1373_v21, %v1370_v20  ;;  %v1491_v33 = vshll.u32 %v2250_v3, 16  ;;  %v1497_v34 = vshll.u32 %v2251_v9, 16  ;;  %v2281_v13 = vld [vmem:[%s2740_s6 + $0x68] sm:$0x1] }
  0xa0   : > { %v1481_v35 = vrot.slane %v1480_v26, 4  ;;  %v1383_v36 = vrot.slane %v1381_v27, 4  ;;  %v1389_v37 = vrot.slane %v1387_v28, 5  ;;  %v1490_v38 = vrot.slane %v1488_v29, 4  ;;  %v2268_v20 = vld [vmem:[%s2740_s6 + $0x34] sm:$0xf] }
  0xa1   : > { %v1476_v41 = vsel %vm2796_vm5, %v1471_v30, %v1475_v16  ;;  %v1375_v42 = vrot.slane %v1374_v31, 4  ;;  %v1493_v43 = vrot.slane %v1491_v33, 5  ;;  %v1499_v44 = vrot.slane %v1497_v34, 5  ;;  %v2269_v21 = vld [vmem:[%s2740_s6 + $0x38] sm:$0x1] }
  0xa2   : > { %1175 = vrot.lane.b32.xlu0 %v2198_v15, %s2640_s21  ;;  %1274 = vrot.lane.b32.xlu1 %v2526_v25, %s2641_s24  ;;  %v1486_v48 = vsel %vm2796_vm5, %v1481_v35, %v1485_v18  ;;  %v1384_v49 = vor.u32 %v1383_v36, %v1379_v22  ;;  %v1501_v50 = vshrl.u32 %v2251_v9, 16  ;;  %v1507_v51 = vshll.u32 %v2252_v32, 16  ;;  %v2267_v15 = vld [vmem:[%s2740_s6 + $0x30] sm:$0xe]  ;;  %v2282_v29 = vld [vmem:[%s2740_s6 + $0x6c] sm:$0xe] }
  0xa3   : > { %v2259_v53 = vcombine.low %v1476_v41, %v1486_v48  ;;  %v1380_v54 = vsel %vm2796_vm5, %v1375_v42, %v1379_v22  ;;  %v1494_v55 = vor.u32 %v1493_v43, %v1490_v38  ;;  %v1392_v58 = vshrl.u32 %v2238_v39, 16  ;;  %v3148_v22 = vpop.permute.xlu0 %644  ;;  %v2283_v34 = vld [vmem:[%s2740_s6 + $0x70] sm:$0xf]  ;;  %v2531_v48 = vld [vmem:[%s2740_s6] sm:$0xff]  }
  0xa4   : > { %v1385_v61 = vrot.slane %v1384_v49, 4  ;;  %v1503_v62 = vrot.slane %v1501_v50, 4  ;;  %v1509_v63 = vrot.slane %v1507_v51, 5  ;;  %v1395_v1 = vshll.u32 %v2238_v39, 16  ;;  %v2532_v49 = vld [vmem:[%s2740_s6 + $0x3c] sm:$0xff]   ;;  %v2533_v50 = vld [vmem:[%s2740_s6 + $0x30] sm:$0xff]  }
  0xa5   : > { %v1495_v3 = vrot.slane %v1494_v55, 4  ;;  %v1394_v4 = vrot.slane %v1392_v58, 4  ;;  %v1401_v5 = vshll.u32 %v2239_v52, 16  ;;  %v1405_v6 = vshrl.u32 %v2239_v52, 16  ;;  %v481_v35 = vpop.permute.xlu1 %480  ;;  %v2534_v51 = vld [vmem:[%s2740_s6 + $0x48] sm:$0xff]   ;;  %v2535_v52 = vld [vmem:[%s2740_s6 + $0x18] sm:$0xff]  }
  0xa6   : > { %1266 = vrot.lane.b32.xlu0 %v2527_v40, %s2641_s24  ;;  %1276 = vrot.lane.b32.xlu1 %v2528_v47, %s2641_s24  ;;  %v1390_v9 = vsel %vm2796_vm5, %v1385_v61, %v1389_v37  ;;  %v1504_v10 = vor.u32 %v1503_v62, %v1499_v44  ;;  %v1397_v11 = vrot.slane %v1395_v1, 5  ;;  %v1411_v12 = vshll.u32 %v2240_v57, 16  ;;  %v2284_v40 = vld [vmem:[%s2740_s6 + $0x74] sm:$0x1]  ;;  %v2530_v47 = vld [vmem:[%s2740_s6 + $0xc] sm:$0xff]   ;;  %227 = vst.msk [vmem:[#allocation2] sm:$0xff] %vm226_vm6, %v2531_v48 }
  0xa7   : > { %v2255_v16 = vcombine.low %v1380_v54, %v1390_v9  ;;  %v1500_v17 = vsel %vm2796_vm5, %v1495_v3, %v1499_v44  ;;  %v1403_v18 = vrot.slane %v1401_v5, 5  ;;  %v1407_v19 = vrot.slane %v1405_v6, 4  ;;  %v2270_v58 = vld [vmem:[%s2740_s6 + $0x3c] sm:$0xe]  ;;  %v2538_v5 = vld [vmem:[%s2740_s6 + $0x24] sm:$0xff]   ;;  %228 = vst.msk [vmem:[#allocation2 + $0x8] sm:$0xff] %vm226_vm6, %v2530_v47 }
  0xa8   : > { %v1505_v25 = vrot.slane %v1504_v10, 4  ;;  %v1398_v26 = vor.u32 %v1397_v11, %v1394_v4  ;;  %v1413_v27 = vrot.slane %v1411_v12, 5  ;;  %v2291_v28 = vrot.slane %v2279_v2, 9  ;;  %v2272_v2 = vld [vmem:[%s2740_s6 + $0x44] sm:$0x1]  ;;  %v2537_v4 = vld [vmem:[%s2740_s6 + $0x54] sm:$0xff]  }
  0xa9   : > { %v1408_v30 = vor.u32 %v1407_v19, %v1403_v18  ;;  %v1660_v31 = vrot.slane %v2280_v8, 5  ;;  %v1663_v32 = vrot.slane %v2281_v13, 5  ;;  %v2287_v33 = vrot.slane %v2267_v15, 9  ;;  %v479_v3 = vpop.permute.xlu0 %478  ;;  %232 = vst.msk [vmem:[#allocation2 + $0x28] sm:$0xff] %vm226_vm6, %v2532_v49  ;;  %231 = vst.msk [vmem:[#allocation2 + $0x20] sm:$0xff] %vm226_vm6, %v2533_v50 }
  0xaa   : > { %1268 = vrot.lane.b32.xlu0 %v2529_v60, %s2641_s24  ;;  %1547 = vrot.lane.b32.xlu1 %v2259_v53, %s2642_s25  ;;  %v1510_v36 = vsel %vm2796_vm5, %v1505_v25, %v1509_v63  ;;  %v1399_v37 = vrot.slane %v1398_v26, 4  ;;  %v1632_v38 = vrot.slane %v2268_v20, 5  ;;  %v1635_v39 = vrot.slane %v2269_v21, 5  ;;  %v2271_v60 = vld [vmem:[%s2740_s6 + $0x40] sm:$0xf]  ;;  %233 = vst.msk [vmem:[#allocation2 + $0x30] sm:$0xff] %vm226_vm6, %v2534_v51  ;;  %s3286_s24 = scalar_lea.hbm %s3346_s2, %s2330_s18 }
  0xab   : > { %v2260_v41 = vcombine.low %v1500_v17, %v1510_v36  ;;  %v1409_v42 = vrot.slane %v1408_v30, 4  ;;  %v1661_v43 = vsel %vm2742_vm2, %v2291_v28, %v1660_v31  ;;  %v1662_v44 = vrot.slane %v1660_v31, 4  ;;  %229 = vst.msk [vmem:[#allocation2 + $0x10] sm:$0xff] %vm226_vm6, %v2535_v52  ;;  %234 = vst.msk [vmem:[#allocation2 + $0x38] sm:$0xff] %vm226_vm6, %v2537_v4  ;;  %v2539_v26 = vld [vmem:[%s3345_s1 + $0x8] sm:$0x3f]  }
  0xac   : > { %v1404_v53 = vsel %vm2796_vm5, %v1399_v37, %v1403_v18  ;;  %v1633_v54 = vsel %vm2742_vm2, %v2287_v33, %v1632_v38  ;;  %v1634_v55 = vrot.slane %v1632_v38, 4  ;;  %v2292_v57 = vrot.slane %v2282_v29, 9  ;;  %230 = vst.msk [vmem:[#allocation2 + $0x18] sm:$0xff] %vm226_vm6, %v2538_v5  ;;  %s150_s6 = scalar_lea.vmem [#allocation3], %s2068_s5 }
  0xad   : > { %v1414_v61 = vsel %vm2796_vm5, %v1409_v42, %v1413_v27  ;;  %v1664_v62 = vsel %vm2742_vm2, %v1662_v44, %v1663_v32  ;;  %v1667_v63 = vrot.slane %v2283_v34, 5  ;;  %v1670_v1 = vrot.slane %v2284_v40, 5  ;;  %v489_v13 = vpop.permute.xlu1 %488  ;;  %504 = vst.msk [vmem:[#allocation2 + $0x8] sm:$0xff] %vm502_vm7, %v481_v35  ;;  %503 = vst.msk [vmem:[#allocation2] sm:$0xff] %vm502_vm7, %v479_v3  ;;  %s1977_s21 = sshll.u32 %s150_s6, 4  ;;  %s3288_s21 = int_to_ptr.vmem [resolvable:$true] %s1977_s21 }
  0xae   : > { %1539 = vrot.lane.b32.xlu0 %v2255_v16, %s2642_s25  ;;  %1549 = vrot.lane.b32.xlu1 %v2260_v41, %s2642_s25  ;;  %v2256_v6 = vcombine.low %v1404_v53, %v1414_v61  ;;  %v2299_v8 = vcombine.low %v1661_v43, %v1664_v62  ;;  %v1636_v9 = vsel %vm2742_vm2, %v1634_v55, %v1635_v39  ;;  %v2288_v11 = vrot.slane %v2270_v58, 9  ;;  %p2547_p2 = scmp.lt.s32.totalorder %s3288_s21, %s2545_s29 }
  0xaf   : > { %v1668_v7 = vsel %vm2742_vm2, %v2292_v57, %v1667_v63  ;;  %v1669_v10 = vrot.slane %v1667_v63, 4  ;;  %v1639_v12 = vrot.slane %v2271_v60, 5  ;;  %v1642_v15 = vrot.slane %v2272_v2, 5  ;;  %508 = vst.msk [vmem:[#allocation2 + $0x28] sm:$0xff] %vm502_vm7, %v489_v13 }
  0xb0   : > { %v2295_v18 = vcombine.low %v1633_v54, %v1636_v9  ;;  %668 = vst.msk [vmem:[#allocation2 + $0x8] sm:$0xff] %vm666_vm8, %v3148_v22  ;;  %667 = vst.msk [vmem:[#allocation2] sm:$0xff] %vm666_vm8, %v3122_v45  ;;  %v1779_v45 = vsel %vm1777_vm10, 4294967295, %v2644_v0 }
  0xb1   : > { %v1671_v16 = vsel %vm2742_vm2, %v1669_v10, %v1670_v1  ;;  %v1641_v17 = vrot.slane %v1639_v12, 4  ;;  %v1640_v20 = vsel %vm2742_vm2, %v2288_v11, %v1639_v12  ;;  %672 = vst.msk [vmem:[#allocation2 + $0x28] sm:$0xff] %vm666_vm8, %v3133_v59 }
  0xb2   : > { %1541 = vrot.lane.b32.xlu0 %v2256_v6, %s2642_s25  ;;  %1708 = vrot.lane.b32.xlu1 %v2299_v8, %s2643_s26  ;;  %v2300_v19 = vcombine.low %v1668_v7, %v1671_v16  ;;  %760 = vst.msk [vmem:[#allocation2] sm:$0xff] %vm759_vm9, %v3087_v46  ;;  %761 = vst.msk [vmem:[#allocation2 + $0x8] sm:$0xff] %vm759_vm9, %v3110_v14  ;;  %v1780_v46 = vsel %vm1778_vm11, %v1779_v45, 0  ;;  %s3292_s25 = scalar_lea.sflag [#allocation4], %s148_s4 }
  0xb3   : > { %v1643_v21 = vsel %vm2742_vm2, %v1641_v17, %v1642_v15  ;;  %v487_v25 = vpop.permute.xlu0 %486  ;;  %765 = vst.msk [vmem:[#allocation2 + $0x28] sm:$0xff] %vm759_vm9, %v3097_v56  ;;  %v1782_v22 = vand.u32 %v2539_v26, %v1780_v46 }
  0xb4   : > { %507 = vst.msk [vmem:[#allocation2 + $0x20] sm:$0xff] %vm502_vm7, %v487_v25  ;;  %v2296_v59 = vcombine.low %v1640_v20, %v1643_v21 }
  0xb5   : > { %671 = vst.msk [vmem:[#allocation2 + $0x20] sm:$0xff] %vm666_vm8, %v3112_v24  ;;  %2409 = vmatprep.subr.bf16.mxu0 %v1782_v22  ;;  %2428 = vmatprep.subr.bf16.mxu1 %v1782_v22 }
  0xb6   : > { %1700 = vrot.lane.b32.xlu0 %v2295_v18, %s2643_s26  ;;  %1710 = vrot.lane.b32.xlu1 %v2300_v19, %s2643_s26  ;;  %764 = vst.msk [vmem:[#allocation2 + $0x20] sm:$0xff] %vm759_vm9, %v3069_v23 }
  0xb7   : > { %v1017_v14 = vpop.permute.xlu1 %1016  ;;  %2410 = vmatpush3.bf16.msra.mxu0 %v1782_v22  ;;  %2430 = vmatpush3.bf16.msra.mxu1 %v1782_v22 }
  0xb8   : > { %1037 = vst.msk [vmem:[#allocation2 + $0x20] sm:$0xff] %vm1032_vm12, %v1017_v14 }
  0xba   : > { %1702 = vrot.lane.b32.xlu0 %v2296_v59, %s2643_s26  ;;  %v1009_v56 = vpop.permute.xlu0 %1008  ;;  %s2540_s26 = scalar_lea.vmem %s3288_s21, 1024 }
  0xbb   : > { %1033 = vst.msk [vmem:[#allocation2] sm:$0xff] %vm1032_vm12, %v1009_v56  ;;  %p2541_p13 = scmp.ne.s32.totalorder %s3288_s21, %s2540_s26  ;;  %p2548_p4 = scmp.lt.s32.totalorder %s2546_s30, %s2540_s26 }
  0xbd   : > { %p2542_p0 = pnand %p2541_p13, %p2714_p3  ;;  %p2549_p5 = por %p2548_p4, %p2547_p2 }
  0xbf   : > { %v1019_v24 = vpop.permute.xlu1 %1018  ;;  %p2543_p1 = pneg %p2542_p0 }
  0xc0   : > { %1038 = vst.msk [vmem:[#allocation2 + $0x28] sm:$0xff] %vm1032_vm12, %v1019_v24 }
  0xc1   : > { %p2550_p6 = pnand %p2549_p5, %p2543_p1 }
  0xc2   : > { %v1011_v27 = vpop.permute.xlu0 %1010 }
  0xc3   : > { %1034 = vst.msk [vmem:[#allocation2 + $0x8] sm:$0xff] %vm1032_vm12, %v1011_v27  ;;  %v1178_v23 = vpop.permute.xlu1 %1177 }
  0xc4   : > { %1198 = vst.msk [vmem:[#allocation2 + $0x20] sm:$0xff] %vm1193_vm13, %v1178_v23 }
  0xc6   : > { %v1170_v28 = vpop.permute.xlu0 %1169 }
  0xc7   : > { %1194 = vst.msk [vmem:[#allocation2] sm:$0xff] %vm1193_vm13, %v1170_v28  ;;  %v1180_v29 = vpop.permute.xlu1 %1179 }
  0xc8   : > { %1199 = vst.msk [vmem:[#allocation2 + $0x28] sm:$0xff] %vm1193_vm13, %v1180_v29 }
  0xca   : > { %v1172_v30 = vpop.permute.xlu0 %1171 }
  0xcb   : > { %1195 = vst.msk [vmem:[#allocation2 + $0x8] sm:$0xff] %vm1193_vm13, %v1172_v30  ;;  %v1271_v31 = vpop.permute.xlu1 %1270 }
  0xcc   : > { %1291 = vst.msk [vmem:[#allocation2 + $0x20] sm:$0xff] %vm1286_vm14, %v1271_v31 }
  0xce   : > { %v1263_v32 = vpop.permute.xlu0 %1262 }
  0xcf   : > { %1287 = vst.msk [vmem:[#allocation2] sm:$0xff] %vm1286_vm14, %v1263_v32  ;;  %v1273_v33 = vpop.permute.xlu1 %1272 }
  0xd0   : > { %1292 = vst.msk [vmem:[#allocation2 + $0x28] sm:$0xff] %vm1286_vm14, %v1273_v33 }
  0xd2   : > { %v1265_v34 = vpop.permute.xlu0 %1264 }
  0xd3   : > { %1288 = vst.msk [vmem:[#allocation2 + $0x8] sm:$0xff] %vm1286_vm14, %v1265_v34  ;;  %v1544_v35 = vpop.permute.xlu1 %1543 }
  0xd4   : > { %1564 = vst.msk [vmem:[#allocation2 + $0x20] sm:$0xff] %vm1559_vm15, %v1544_v35 }
  0xd6   : > { %v1536_v36 = vpop.permute.xlu0 %1535 }
  0xd7   : > { %1560 = vst.msk [vmem:[#allocation2] sm:$0xff] %vm1559_vm15, %v1536_v36  ;;  %v1546_v37 = vpop.permute.xlu1 %1545 }
  0xd8   : > { %1565 = vst.msk [vmem:[#allocation2 + $0x28] sm:$0xff] %vm1559_vm15, %v1546_v37 }
  0xdb   : > { %v1705_v38 = vpop.permute.xlu1 %1704 }
  0xdc   : > { %v1538_v39 = vpop.permute.xlu0 %1537  ;;  %1725 = vst.msk [vmem:[#allocation2 + $0x20] sm:$0xff] %vm1720_vm0, %v1705_v38 }
  0xdd   : > { %1561 = vst.msk [vmem:[#allocation2 + $0x8] sm:$0xff] %vm1559_vm15, %v1538_v39 }
  0xe0   : > { %v1697_v40 = vpop.permute.xlu0 %1696 }
  0xe1   : > { %1721 = vst.msk [vmem:[#allocation2] sm:$0xff] %vm1720_vm0, %v1697_v40 }
  0xe3   : > { %v491_v41 = vpop.permute.xlu1 %490  ;;  %v1733_v42 = vld [vmem:[#allocation2 + $0x20] sm:$0xff] }
  0xe4   : > { %509 = vst.msk [vmem:[#allocation2 + $0x30] sm:$0xff] %vm502_vm7, %v491_v41  ;;  %2419 = vmatprep.mubr.msk.bf16.mxu1 %vm1752_vm1, %v1733_v42 }
  0xe6   : > { %v483_v43 = vpop.permute.xlu0 %482 }
  0xe7   : > { %505 = vst.msk [vmem:[#allocation2 + $0x10] sm:$0xff] %vm502_vm7, %v483_v43  ;;  %v1707_v44 = vpop.permute.xlu1 %1706 }
  0xe8   : > { %1726 = vst.msk [vmem:[#allocation2 + $0x28] sm:$0xff] %vm1720_vm0, %v1707_v44  ;;  %v1729_v47 = vld [vmem:[#allocation2] sm:$0xff] }
  0xe9   : > { %2411 = vmatprep.mubr.msk.bf16.mxu0 %vm1752_vm1, %v1729_v47 }
  0xea   : > { %v1699_v48 = vpop.permute.xlu0 %1698 }
  0xeb   : > { %1722 = vst.msk [vmem:[#allocation2 + $0x8] sm:$0xff] %vm1720_vm0, %v1699_v48 }
  0xef   : > { %v1734_v49 = vld [vmem:[#allocation2 + $0x28] sm:$0xff] }
  0xf0   : > { %v493_v50 = vpop.permute.xlu1 %492  ;;  %2420 = vmatmul.mubr.msk.bf16.vlgmr.msra.gmra.mrb[0].mxu1 %vm1752_vm1, %v1734_v49 }
  0xf1   : > { %510 = vst.msk [vmem:[#allocation2 + $0x38] sm:$0xff] %vm502_vm7, %v493_v50 }
  0xf2   : > { %v485_v51 = vpop.permute.xlu0 %484  ;;  %v1730_v52 = vld [vmem:[#allocation2 + $0x8] sm:$0xff] }
  0xf3   : > { %506 = vst.msk [vmem:[#allocation2 + $0x18] sm:$0xff] %vm502_vm7, %v485_v51  ;;  %2412 = vmatmul.mubr.msk.bf16.vlgmr.msra.gmra.mrb[0].mxu0 %vm1752_vm1, %v1730_v52 }
  0xf4   : > { %v655_v53 = vpop.permute.xlu1 %654 }
  0xf5   : > { %673 = vst.msk [vmem:[#allocation2 + $0x30] sm:$0xff] %vm666_vm8, %v655_v53 }
  0xf6   : > { %v647_v54 = vpop.permute.xlu0 %646 }
  0xf7   : > { %669 = vst.msk [vmem:[#allocation2 + $0x10] sm:$0xff] %vm666_vm8, %v647_v54 }
  0xf8   : > { %v657_v55 = vpop.permute.xlu1 %656 }
  0xf9   : > { %674 = vst.msk [vmem:[#allocation2 + $0x38] sm:$0xff] %vm666_vm8, %v657_v55 }
  0xfa   : > { %v649_v57 = vpop.permute.xlu0 %648 }
  0xfb   : > { %670 = vst.msk [vmem:[#allocation2 + $0x18] sm:$0xff] %vm666_vm8, %v649_v57 }
  0xfc   : > { %v748_v58 = vpop.permute.xlu1 %747 }
  0xfd   : > { %766 = vst.msk [vmem:[#allocation2 + $0x30] sm:$0xff] %vm759_vm9, %v748_v58 }
  0xfe   : > { %v740_v60 = vpop.permute.xlu0 %739 }
  0xff   : > { %762 = vst.msk [vmem:[#allocation2 + $0x10] sm:$0xff] %vm759_vm9, %v740_v60 }
 0x100   : > { %v750_v61 = vpop.permute.xlu1 %749 }
 0x101   : > { %767 = vst.msk [vmem:[#allocation2 + $0x38] sm:$0xff] %vm759_vm9, %v750_v61 }
 0x102   : > { %v742_v62 = vpop.permute.xlu0 %741 }
 0x103   : > { %763 = vst.msk [vmem:[#allocation2 + $0x18] sm:$0xff] %vm759_vm9, %v742_v62 }
 0x104   : > { %v1021_v63 = vpop.permute.xlu1 %1020 }
 0x105   : > { %1039 = vst.msk [vmem:[#allocation2 + $0x30] sm:$0xff] %vm1032_vm12, %v1021_v63 }
 0x106   : > { %v1013_v1 = vpop.permute.xlu0 %1012 }
 0x107   : > { %1035 = vst.msk [vmem:[#allocation2 + $0x10] sm:$0xff] %vm1032_vm12, %v1013_v1 }
 0x108   : > { %v1023_v2 = vpop.permute.xlu1 %1022 }
 0x109   : > { %1040 = vst.msk [vmem:[#allocation2 + $0x38] sm:$0xff] %vm1032_vm12, %v1023_v2 }
 0x10c   : > { %v1015_v3 = vpop.permute.xlu0 %1014  ;;  %v1182_v4 = vpop.permute.xlu1 %1181 }
 0x10d   : > { %1036 = vst.msk [vmem:[#allocation2 + $0x18] sm:$0xff] %vm1032_vm12, %v1015_v3 }
 0x10e   : > { %1200 = vst.msk [vmem:[#allocation2 + $0x30] sm:$0xff] %vm1193_vm13, %v1182_v4 }
 0x110   : > { %v1174_v5 = vpop.permute.xlu0 %1173  ;;  %v1184_v6 = vpop.permute.xlu1 %1183 }
 0x111   : > { %1196 = vst.msk [vmem:[#allocation2 + $0x10] sm:$0xff] %vm1193_vm13, %v1174_v5  ;;  %1201 = vst.msk [vmem:[#allocation2 + $0x38] sm:$0xff] %vm1193_vm13, %v1184_v6 }
 0x114   : > { %v1176_v8 = vpop.permute.xlu0 %1175  ;;  %v1275_v9 = vpop.permute.xlu1 %1274 }
 0x115   : > { %1197 = vst.msk [vmem:[#allocation2 + $0x18] sm:$0xff] %vm1193_vm13, %v1176_v8 }
 0x116   : > { %1293 = vst.msk [vmem:[#allocation2 + $0x30] sm:$0xff] %vm1286_vm14, %v1275_v9 }
 0x118   : > { %v1267_v7 = vpop.permute.xlu0 %1266  ;;  %v1277_v10 = vpop.permute.xlu1 %1276 }
 0x119   : > { %1289 = vst.msk [vmem:[#allocation2 + $0x10] sm:$0xff] %vm1286_vm14, %v1267_v7  ;;  %1294 = vst.msk [vmem:[#allocation2 + $0x38] sm:$0xff] %vm1286_vm14, %v1277_v10 }
 0x11c   : > { %v1269_v11 = vpop.permute.xlu0 %1268  ;;  %v1548_v12 = vpop.permute.xlu1 %1547 }
 0x11d   : > { %1290 = vst.msk [vmem:[#allocation2 + $0x18] sm:$0xff] %vm1286_vm14, %v1269_v11 }
 0x11e   : > { %1566 = vst.msk [vmem:[#allocation2 + $0x30] sm:$0xff] %vm1559_vm15, %v1548_v12 }
 0x120   : > { %v1540_v13 = vpop.permute.xlu0 %1539  ;;  %v1550_v15 = vpop.permute.xlu1 %1549 }
 0x121   : > { %1562 = vst.msk [vmem:[#allocation2 + $0x10] sm:$0xff] %vm1559_vm15, %v1540_v13  ;;  %1567 = vst.msk [vmem:[#allocation2 + $0x38] sm:$0xff] %vm1559_vm15, %v1550_v15 }
 0x124   : > { %v1542_v16 = vpop.permute.xlu0 %1541  ;;  %v1709_v17 = vpop.permute.xlu1 %1708 }
 0x125   : > { %1563 = vst.msk [vmem:[#allocation2 + $0x18] sm:$0xff] %vm1559_vm15, %v1542_v16 }
 0x126   : > { %1727 = vst.msk [vmem:[#allocation2 + $0x30] sm:$0xff] %vm1720_vm0, %v1709_v17 }
 0x128   : > { %v1701_v18 = vpop.permute.xlu0 %1700  ;;  %v1711_v19 = vpop.permute.xlu1 %1710 }
 0x129   : > { %1723 = vst.msk [vmem:[#allocation2 + $0x10] sm:$0xff] %vm1720_vm0, %v1701_v18  ;;  %1728 = vst.msk [vmem:[#allocation2 + $0x38] sm:$0xff] %vm1720_vm0, %v1711_v19 }
 0x12c   : > { %v1703_v20 = vpop.permute.xlu0 %1702 }
 0x12d   : > { %v1735_v21 = vld [vmem:[#allocation2 + $0x30] sm:$0xff]  ;;  %1724 = vst.msk [vmem:[#allocation2 + $0x18] sm:$0xff] %vm1720_vm0, %v1703_v20 }
 0x12e   : > { %2423 = vmatprep.mubr.msk.bf16.mxu1 %vm1752_vm1, %v1735_v21 }
 0x130   : > { %v1731_v25 = vld [vmem:[#allocation2 + $0x10] sm:$0xff]  ;;  %v1736_v26 = vld [vmem:[#allocation2 + $0x38] sm:$0xff] }
 0x131   : > { %2415 = vmatprep.mubr.msk.bf16.mxu0 %vm1752_vm1, %v1731_v25  ;;  %2424 = vmatmul.mubr.msk.bf16.gmra.mrb[4].mxu1 %vm1752_vm1, %v1736_v26 }
 0x134   : > { %v1732_v0 = vld [vmem:[#allocation2 + $0x18] sm:$0xff] }
 0x135   : > { %2416 = vmatmul.mubr.msk.bf16.gmra.mrb[4].mxu0 %vm1752_vm1, %v1732_v0 }
 0x1c3   : > { %v2421_v45 = vpop.f32.mrb[0].mxu1 }
 0x1c4   : > { %v1850_v59 = vpop.f32.mrb[1].mxu1 }
 0x1c5   : > { %v2422_v46 = vpop.f32.mrb[2].mxu1 }
 0x1c6   : > { %v2413_v14 = vpop.f32.mrb[0].mxu0  ;;  %v2378_v22 = vpack.c.bf16 %v2422_v46, %v2421_v45  ;;  %v1853_v56 = vpop.f32.mrb[3].mxu1 }
 0x1c7   : > { %v1818_v24 = vpop.f32.mrb[1].mxu0  ;;  %v2373_v27 = vpack.c.bf16 %v1853_v56, %v1850_v59 }
 0x1c8   : > { %v2414_v23 = vpop.f32.mrb[2].mxu0  ;;  %2394 = vst [vmem:[%s150_s6 + $0x28] sm:$0xff] %v2378_v22  }
 0x1c9   : > { %v2358_v28 = vpack.c.bf16 %v2414_v23, %v2413_v14  ;;  %v1821_v29 = vpop.f32.mrb[3].mxu0  ;;  %2393 = vst [vmem:[%s150_s6 + $0x20] sm:$0xff] %v2373_v27  }
 0x1ca   : > { %v2353_v30 = vpack.c.bf16 %v1821_v29, %v1818_v24 }
 0x1cb   : > { %2390 = vst [vmem:[%s150_s6 + $0x8] sm:$0xff] %v2358_v28  }
 0x1cc   : > { %2354 = vst [vmem:[%s150_s6] sm:$0xff] %v2353_v30  }
 0x204   : > { %v2425_v31 = vpop.f32.mrb[4].mxu1 }
 0x205   : > { %v1866_v32 = vpop.f32.mrb[5].mxu1 }
 0x206   : > { %v2426_v33 = vpop.f32.mrb[6].mxu1 }
 0x207   : > { %v2388_v34 = vpack.c.bf16 %v2426_v33, %v2425_v31  ;;  %v1869_v35 = vpop.f32.mrb[7].mxu1 }
 0x208   : > { %v2417_v36 = vpop.f32.mrb[4].mxu0  ;;  %v2383_v37 = vpack.c.bf16 %v1869_v35, %v1866_v32 }
 0x209   : > { %v1834_v38 = vpop.f32.mrb[5].mxu0  ;;  %2396 = vst [vmem:[%s150_s6 + $0x38] sm:$0xff] %v2388_v34  }
 0x20a   : > { %v2418_v39 = vpop.f32.mrb[6].mxu0  ;;  %2395 = vst [vmem:[%s150_s6 + $0x30] sm:$0xff] %v2383_v37  }
 0x20b   : > { %v2368_v40 = vpack.c.bf16 %v2418_v39, %v2417_v36  ;;  %v1837_v41 = vpop.f32.mrb[7].mxu0 }
 0x20c   : > { %v2363_v42 = vpack.c.bf16 %v1837_v41, %v1834_v38 }
 0x20d   : > { %2392 = vst [vmem:[%s150_s6 + $0x18] sm:$0xff] %v2368_v40  }
 0x20e   : > { %2391 = vst [vmem:[%s150_s6 + $0x10] sm:$0xff] %v2363_v42  }
 0x20f   : > { %2553 = shalt.err (!%p2550_p6)
}
 0x210   : > { %s2554_s3 = scalar_lea.hbm %s3286_s24, 1024  ;;  %s2558_s6 = scalar_lea.hbm %s3346_s2, 4096 }
 0x211   : > { %p2555_p7 = scmp.ne.s32.totalorder %s3286_s24, %s2554_s3  ;;  %p2559_p11 = scmp.lt.u32.totalorder %s3286_s24, %s3346_s2 }
 0x212   : > { %p2560_p12 = scmp.lt.u32.totalorder %s2558_s6, %s2554_s3  ;;  %p2562_p0 = scmp.lt.u32.totalorder %s2554_s3, %s3286_s24 }
 0x213   : > { %p2556_p9 = pnand %p2555_p7, %p2714_p3 }
 0x214   : > { %p2561_p13 = por %p2560_p12, %p2559_p11 }
 0x215   : > { %p2557_p10 = pneg %p2556_p9 }
 0x216   : > { %p2563_p1 = por %p2562_p0, %p2561_p13 }
 0x218   : > { %p2564_p2 = pnand %p2563_p1, %p2557_p10 }
 0x21a   : > { %2567 = shalt.err (!%p2564_p2)
}
 0x21b   : > { %s2646_s17 = smov 64   ;;  %s2647_s18 = smov 4  }
 0x21c   : > { %2432 = dma.vmem_to_hbm [thread:$0]  (%p2714_p3), %s3288_s21, 1024, %s3286_s24, %s3292_s25, %s2646_s17, %s2646_s17, %s2647_s18  }
 0x21d PF: > { %p2438_p4 = scmp.ge.s32.totalorder %s2634_s16, 2  ;;  %s1992_s12 = sand.u32 1, %s2606_s9  }
 0x21e   : > { %s1993_s13 = scalar_lea.sflag [#allocation4], %s1992_s12 }
 0x21f   : > { %p2435_p5 = pnand %p2438_p4, %p2723_p8 }
 0x221   : > { %2601 = dma.done.wait (!%p2435_p5), %s1993_s13, 1024  }
 0x222   : > { %2603 = vsyncadd (!%p2435_p5), %s1993_s13, 4294966272  ;;  %s15_s16 = sadd.s32 1, %s2634_s16   ;;  %s3353_s9 = smov %s2610_s10 }
 0x223   : > { %p12_p6 = scmp.ge.s32.totalorder %s15_s16, 6   ;;  %s3354_s10 = smov %s2614_s11 }
 0x224   : > { %s3355_s11 = smov %s2732_s27  ;;  %s3356_s12 = smov %s2626_s14 }
 0x225   : > { %s3357_s13 = smov %s2630_s15  ;;  %s3358_s14 = smov %s3361_s19 }
 0x226   : > { %s3359_s15 = smov %s3365_s20  ;;  %14 = sbr.rel (!%p12_p6) target bundleno = 5 (0x5), region = 66 }
 0x22d   :  { %1998 = vsyncpa [#allocation4], 1 }
 0x22e   :  { %2000 = vsyncpa [#allocation4 + $0x1], 1 }

</bundles_post_ra>
